<compile_context>
chip_gen: v7x
topology: tpu7x:2x2x1
jax: 0.10.0
libtpu: 0.0.40
codegen_flags: <defaults>
</compile_context>

<pallas_src>
import functools
import math

import jax
import jax.numpy as jnp
from jax.experimental import pallas as pl
from jax.experimental.pallas import tpu as pltpu


def _message_kernel(pin_ref, v_ref, wf_ref, bf_ref, w2_ref, b2_ref, out_ref,
                    *, tn, k, f, e):
    r = tn * k
    pin = pin_ref[...]                                   # [r, C] = [s|exp|gate|dir|pad]

    # Fused block-diagonal matmul: cols [0:F) = s@W1+b1, cols [F:4F) = exp@W3+b3.
    fused = jnp.dot(pin, wf_ref[...],
                    preferred_element_type=jnp.float32) + bf_ref[...]   # [r, 4F] f32

    h = fused[:, :f]
    h = h * jax.nn.sigmoid(h)                            # SiLU in f32 (v5e-safe)
    right = fused[:, f:]                                 # [r, 3F]  (= exp@W3 + b3)

    left = jnp.dot(h.astype(w2_ref.dtype), w2_ref[...],
                   preferred_element_type=jnp.float32) + b2_ref[...]    # [r, 3F]

    # Side scalars ride along in the packed input (gate = cosine_cutoff * mask,
    # so the neighbor mask is already folded in).
    gate = pin[:, f + e:f + e + 1].astype(jnp.float32)          # [r, 1]
    dirs = pin[:, f + e + 1:f + e + 4].astype(jnp.float32)      # [r, 3]

    m = left * (right * gate)                            # [r, 3F]
    a = m[:, :f]
    b = m[:, f:2 * f]
    c = m[:, 2 * f:]

    # dv at full 3F lane width instead of three F-lane chains.
    a_rep = jnp.concatenate([a, a, a], axis=-1)          # [r, 3F]
    c_rep = jnp.concatenate([c, c, c], axis=-1)          # [r, 3F]
    dir_rep = jnp.concatenate(
        [jnp.broadcast_to(dirs[:, i:i + 1], (r, f)) for i in range(3)],
        axis=-1)                                         # [r, 3F]
    v3f = v_ref[...].astype(jnp.float32)                 # [r, 3F]
    dv = v3f * a_rep + dir_rep * c_rep                   # [r, 3F]

    # Single 4F(=128 at F=32)-lane K-reduction + one unmasked full-width store.
    # NOTE: the (tn, k, 4F) reshape is tile-friendliest when K % 8 == 0.
    packed = jnp.concatenate([b, dv], axis=-1)           # [r, 4F]
    out_ref[...] = jnp.sum(packed.reshape(tn, k, 4 * f),
                           axis=1).astype(out_ref.dtype)  # [tn, 4F]


def _vmem_capacity_bytes():
    try:
        cap = int(getattr(pltpu.get_tpu_info(), "vmem_capacity_bytes"))
        if cap > 0:
            return cap
    except Exception:
        pass
    return 64 * 1024 * 1024          # v7x-safe fallback


def _pick_tn(N, K, c_in, f, io_itemsize):
    """Atoms per grid step, sized from VMEM rather than a fixed row budget."""
    cap = _vmem_capacity_bytes()
    in_row = (c_in + 3 * f) * io_itemsize                   # packed input + v, per edge row
    scratch_row = 4 * (4 * f + f + 6 * 3 * f + 4 * f)       # f32 intermediates, rough upper bound
    per_row = 2 * in_row + scratch_row                      # double-buffered inputs + scratch
    budget = cap // 2
    row_cap = 4096 if cap <= (64 << 20) else 8192           # smaller tiles on 64-MiB VMEM (v7x)
    rows = max(K, min(budget // per_row, row_cap))
    tn = max(8, (rows // K) // 8 * 8)                       # tn multiple of 8 (block-shape rule)
    n_pad8 = -(-N // 8) * 8
    return min(tn, n_pad8)


def deepdft_eqv_message(s, v, expansion, direction, mask, edge_distance,
                        params, cutoff, *, tn=None, io_dtype=jnp.bfloat16):
    N, K, _, F = s.shape
    E = expansion.shape[-1]
    out_dtype = s.dtype

    C_raw = F + E + 4                        # s | expansion | gate | dir_xyz
    C = -(-C_raw // 8) * 8                   # pad packed width to a sublane multiple

    if tn is None:
        tn = _pick_tn(N, K, C, F, jnp.dtype(io_dtype).itemsize)
    N_pad = -(-N // tn) * tn

    w1, b1, w2, b2, w3, b3 = params
    # Block-diagonal fused weight: one MXU pass gives [s@W1+b1 | exp@W3+b3].
    wf = jnp.zeros((C, 4 * F), jnp.float32)
    wf = wf.at[:F, :F].set(w1.astype(jnp.float32))
    wf = wf.at[F:F + E, F:].set(w3.astype(jnp.float32))
    wf = wf.astype(io_dtype)
    bfuse = jnp.concatenate([b1.reshape(F), b3.reshape(3 * F)]
                            ).reshape(1, 4 * F).astype(jnp.float32)
    w2c = w2.astype(io_dtype)
    b2c = b2.reshape(1, 3 * F).astype(jnp.float32)

    # gate = cosine_cutoff * mask, precomputed in the wrapper (fuses into packing).
    fcut = jnp.where(edge_distance < cutoff,
                     0.5 * (jnp.cos(jnp.float32(math.pi) * edge_distance / cutoff) + 1.0),
                     jnp.float32(0.0))
    gate = (fcut * mask).astype(jnp.float32)                        # [N, K, 1]

    pieces = [s.reshape(N, K, F).astype(jnp.float32),
              expansion.astype(jnp.float32),
              gate,
              direction.astype(jnp.float32)]
    if C > C_raw:
        pieces.append(jnp.zeros((N, K, C - C_raw), jnp.float32))
    pin = jnp.concatenate(pieces, axis=-1).astype(io_dtype)         # [N, K, C]
    v_in = v.reshape(N, K, 3 * F).astype(io_dtype)                  # [N, K, 3F]

    if N_pad > N:                                                   # padded rows: gate = 0
        pin = jnp.pad(pin, ((0, N_pad - N), (0, 0), (0, 0)))
        v_in = jnp.pad(v_in, ((0, N_pad - N), (0, 0), (0, 0)))
    pin = pin.reshape(N_pad * K, C)
    v_in = v_in.reshape(N_pad * K, 3 * F)

    cap = _vmem_capacity_bytes()
    vmem_limit = min(int(0.85 * cap), 100 * 1024 * 1024)            # <=~54 MiB on v7x

    kernel = functools.partial(_message_kernel, tn=tn, k=K, f=F, e=E)
    full = lambda i: (0, 0)

    out = pl.pallas_call(
        kernel,
        grid=(N_pad // tn,),
        in_specs=[
            pl.BlockSpec((tn * K, C), lambda i: (i, 0)),            # packed [s|exp|gate|dir]
            pl.BlockSpec((tn * K, 3 * F), lambda i: (i, 0)),        # v (natural row-major)
            pl.BlockSpec((C, 4 * F), full),                         # fused block-diag weight
            pl.BlockSpec((1, 4 * F), full),                         # fused bias
            pl.BlockSpec((F, 3 * F), full),                         # W2
            pl.BlockSpec((1, 3 * F), full),                         # b2
        ],
        out_specs=pl.BlockSpec((tn, 4 * F), lambda i: (i, 0)),      # packed lane-dense output
        out_shape=jax.ShapeDtypeStruct((N_pad, 4 * F), out_dtype),
        compiler_params=pltpu.CompilerParams(
            dimension_semantics=("parallel",),
            vmem_limit_bytes=vmem_limit),
    )(pin, v_in, wf, bfuse, w2c, b2c)

    delta_s = out[:N, :F].reshape(N, 1, F)
    delta_v = out[:N, F:].reshape(N, 3, F)
    return delta_s, delta_v


def reference(s, v, expansion, direction, mask, edge_distance, params, cutoff):
    """Pure-JAX transcription of the PyTorch forward (for verification)."""
    w1, b1, w2, b2, w3, b3 = params
    F = s.shape[-1]
    h = s @ w1 + b1
    h = h * jax.nn.sigmoid(h)
    left_mul = h @ w2 + b2                                     # [N,K,1,3F]
    right_pre = (expansion @ w3 + b3)[..., None, :]            # [N,K,1,3F]
    fcut = jnp.where(edge_distance < cutoff,
                     0.5 * (jnp.cos(jnp.pi * edge_distance / cutoff) + 1.0),
                     0.0)[..., None]                           # [N,K,1,1]
    right_mul = right_pre * fcut
    m = left_mul * right_mul
    a, b, c = m[..., :F], m[..., F:2 * F], m[..., 2 * F:]
    mask_ = mask[..., None]                                    # [N,K,1,1]
    delta_s = jnp.sum(mask_ * b, axis=-3)                      # [N,1,F]
    delta_v_right = direction[..., None] * c                   # [N,K,3,F]
    delta_v_left = v * a                                       # [N,K,3,F]
    delta_v = jnp.sum(mask_ * (delta_v_left + delta_v_right), axis=-3)
    return delta_s, delta_v


if __name__ == "__main__":
    N, K, F, E = 16, 8, 32, 20
    cutoff = 4.0

    key = jax.random.PRNGKey(0)
    ks = jax.random.split(key, 12)

    s = jax.random.normal(ks[0], (N, K, 1, F), jnp.float32)
    v = jax.random.normal(ks[1], (N, K, 3, F), jnp.float32)
    expansion = jax.random.normal(ks[2], (N, K, E), jnp.float32)
    direction = jax.random.normal(ks[3], (N, K, 3), jnp.float32)
    direction = direction / jnp.linalg.norm(direction, axis=-1, keepdims=True)
    mask = (jax.random.uniform(ks[4], (N, K, 1)) > 0.3).astype(jnp.float32)
    edge_distance = jax.random.uniform(ks[5], (N, K, 1), jnp.float32, 0.1, 5.0)

    # deterministic synthetic parameters (module __init__ shapes, weight^T layout)
    params = (
        0.1 * jax.random.normal(ks[6], (F, F), jnp.float32),        # msg_left[0].weight^T
        0.1 * jax.random.normal(ks[7], (F,), jnp.float32),          # msg_left[0].bias
        0.1 * jax.random.normal(ks[8], (F, 3 * F), jnp.float32),    # msg_left[2].weight^T
        0.1 * jax.random.normal(ks[9], (3 * F,), jnp.float32),      # msg_left[2].bias
        0.1 * jax.random.normal(ks[10], (E, 3 * F), jnp.float32),   # msg_right[0].weight^T
        0.1 * jax.random.normal(ks[11], (3 * F,), jnp.float32),     # msg_right[0].bias
    )

    ref_s, ref_v = reference(s, v, expansion, direction, mask, edge_distance,
                             params, cutoff)

    # f32-I/O path: tight check of the fused-kernel logic.
    ds32, dv32 = deepdft_eqv_message(
        s, v, expansion, direction, mask, edge_distance, params, cutoff,
        io_dtype=jnp.float32)
    jax.block_until_ready((ds32, dv32))
    assert ds32.shape == (N, 1, F) and dv32.shape == (N, 3, F)
    assert jnp.allclose(ds32, ref_s, rtol=2e-2, atol=8e-3), "delta_s mismatch (f32)"
    assert jnp.allclose(dv32, ref_v, rtol=2e-2, atol=8e-3), "delta_v mismatch (f32)"

    # bf16-I/O path (the fast path on all generations): looser check.
    ds16, dv16 = deepdft_eqv_message(
        s, v, expansion, direction, mask, edge_distance, params, cutoff,
        io_dtype=jnp.bfloat16)
    jax.block_until_ready((ds16, dv16))
    assert jnp.allclose(ds16, ref_s, rtol=6e-2, atol=2.5e-2), "delta_s mismatch (bf16)"
    assert jnp.allclose(dv16, ref_v, rtol=6e-2, atol=2.5e-2), "delta_v mismatch (bf16)"

    # Non-divisor N path (exercises the padding logic).
    N2 = 10
    ref_s2, ref_v2 = reference(s[:N2], v[:N2], expansion[:N2], direction[:N2],
                               mask[:N2], edge_distance[:N2], params, cutoff)
    dsp, dvp = deepdft_eqv_message(
        s[:N2], v[:N2], expansion[:N2], direction[:N2], mask[:N2],
        edge_distance[:N2], params, cutoff, io_dtype=jnp.bfloat16)
    jax.block_until_ready((dsp, dvp))
    assert dsp.shape == (N2, 1, F) and dvp.shape == (N2, 3, F)
    assert jnp.allclose(dsp, ref_s2, rtol=6e-2, atol=2.5e-2), "delta_s mismatch (padded)"
    assert jnp.allclose(dvp, ref_v2, rtol=6e-2, atol=2.5e-2), "delta_v mismatch (padded)"

    print("KERNEL_OK")
</pallas_src>

<mosaic_0001>
module attributes {stable_mosaic.version = 11 : i64} {
  func.func @_message_kernel(%arg0: i32, %arg1: memref<128x56xf32, #tpu.memory_space<vmem>>, %arg2: memref<128x96xf32, #tpu.memory_space<vmem>>, %arg3: memref<56x128xf32, #tpu.memory_space<vmem>>, %arg4: memref<1x128xf32, #tpu.memory_space<vmem>>, %arg5: memref<32x96xf32, #tpu.memory_space<vmem>>, %arg6: memref<1x96xf32, #tpu.memory_space<vmem>>, %arg7: memref<16x128xf32, #tpu.memory_space<vmem>>) attributes {dimension_semantics = [#tpu.dimension_semantics<parallel>], iteration_bounds = array<i64: 1>, scalar_prefetch = 0 : i64, scratch_operands = 0 : i64, tpu.core_type = #tpu.core_type<tc>, window_params = [{transform_indices = @transform_0, window_bounds = array<i64: 128, 56>}, {transform_indices = @transform_1, window_bounds = array<i64: 128, 96>}, {pipeline_mode = #tpu.pipeline_mode<synchronous>, transform_indices = @transform_2, window_bounds = array<i64: 56, 128>}, {pipeline_mode = #tpu.pipeline_mode<synchronous>, transform_indices = @transform_3, window_bounds = array<i64: 1, 128>}, {pipeline_mode = #tpu.pipeline_mode<synchronous>, transform_indices = @transform_4, window_bounds = array<i64: 32, 96>}, {pipeline_mode = #tpu.pipeline_mode<synchronous>, transform_indices = @transform_5, window_bounds = array<i64: 1, 96>}, {transform_indices = @transform_6, window_bounds = array<i64: 16, 128>}]} {
    %c0 = arith.constant 0 : index
    %c0_0 = arith.constant 0 : index
    %0 = vector.load %arg1[%c0, %c0_0] : memref<128x56xf32, #tpu.memory_space<vmem>>, vector<128x56xf32>
    %c0_1 = arith.constant 0 : index
    %c0_2 = arith.constant 0 : index
    %1 = vector.load %arg3[%c0_1, %c0_2] : memref<56x128xf32, #tpu.memory_space<vmem>>, vector<56x128xf32>
    %cst = arith.constant dense<0.000000e+00> : vector<128x128xf32>
    %2 = tpu.matmul %0, %1, %cst {dimension_numbers = #tpu.dot_dimension_numbers<[1], [0], [0], [1], [0, 0, 1, 1], [], []>} : vector<128x56xf32>, vector<56x128xf32>, vector<128x128xf32> -> vector<128x128xf32>
    %c0_3 = arith.constant 0 : index
    %c0_4 = arith.constant 0 : index
    %3 = vector.load %arg4[%c0_3, %c0_4] : memref<1x128xf32, #tpu.memory_space<vmem>>, vector<1x128xf32>
    %4 = vector.broadcast %3 : vector<1x128xf32> to vector<128x128xf32>
    %5 = arith.addf %2, %4 : vector<128x128xf32>
    %6 = vector.extract_strided_slice %5 {offsets = [0, 0], sizes = [128, 32], strides = [1, 1]} : vector<128x128xf32> to vector<128x32xf32>
    %7 = arith.negf %6 : vector<128x32xf32>
    %8 = math.exp %7 : vector<128x32xf32>
    %cst_5 = arith.constant 1.000000e+00 : f32
    %9 = vector.broadcast %cst_5 : f32 to vector<128x32xf32>
    %10 = arith.addf %9, %8 : vector<128x32xf32>
    %11 = arith.divf %9, %10 : vector<128x32xf32>
    %12 = arith.mulf %6, %11 : vector<128x32xf32>
    %13 = vector.extract_strided_slice %5 {offsets = [0, 32], sizes = [128, 96], strides = [1, 1]} : vector<128x128xf32> to vector<128x96xf32>
    %c0_6 = arith.constant 0 : index
    %c0_7 = arith.constant 0 : index
    %14 = vector.load %arg5[%c0_6, %c0_7] : memref<32x96xf32, #tpu.memory_space<vmem>>, vector<32x96xf32>
    %cst_8 = arith.constant dense<0.000000e+00> : vector<128x96xf32>
    %15 = tpu.matmul %12, %14, %cst_8 {dimension_numbers = #tpu.dot_dimension_numbers<[1], [0], [0], [1], [0, 0, 1, 1], [], []>} : vector<128x32xf32>, vector<32x96xf32>, vector<128x96xf32> -> vector<128x96xf32>
    %c0_9 = arith.constant 0 : index
    %c0_10 = arith.constant 0 : index
    %16 = vector.load %arg6[%c0_9, %c0_10] : memref<1x96xf32, #tpu.memory_space<vmem>>, vector<1x96xf32>
    %17 = vector.broadcast %16 : vector<1x96xf32> to vector<128x96xf32>
    %18 = arith.addf %15, %17 : vector<128x96xf32>
    %19 = vector.extract_strided_slice %0 {offsets = [0, 52], sizes = [128, 1], strides = [1, 1]} : vector<128x56xf32> to vector<128x1xf32>
    %20 = vector.extract_strided_slice %0 {offsets = [0, 53], sizes = [128, 3], strides = [1, 1]} : vector<128x56xf32> to vector<128x3xf32>
    %21 = vector.broadcast %19 : vector<128x1xf32> to vector<128x96xf32>
    %22 = arith.mulf %13, %21 : vector<128x96xf32>
    %23 = arith.mulf %18, %22 : vector<128x96xf32>
    %24 = vector.extract_strided_slice %23 {offsets = [0, 0], sizes = [128, 32], strides = [1, 1]} : vector<128x96xf32> to vector<128x32xf32>
    %25 = vector.extract_strided_slice %23 {offsets = [0, 32], sizes = [128, 32], strides = [1, 1]} : vector<128x96xf32> to vector<128x32xf32>
    %26 = vector.extract_strided_slice %23 {offsets = [0, 64], sizes = [128, 32], strides = [1, 1]} : vector<128x96xf32> to vector<128x32xf32>
    %27 = tpu.concatenate %24, %24, %24 in 1 : vector<128x32xf32>, vector<128x32xf32>, vector<128x32xf32> -> vector<128x96xf32>
    %28 = tpu.concatenate %26, %26, %26 in 1 : vector<128x32xf32>, vector<128x32xf32>, vector<128x32xf32> -> vector<128x96xf32>
    %29 = vector.extract_strided_slice %20 {offsets = [0, 0], sizes = [128, 1], strides = [1, 1]} : vector<128x3xf32> to vector<128x1xf32>
    %30 = vector.shape_cast %29 : vector<128x1xf32> to vector<128x1xf32>
    %31 = vector.broadcast %30 : vector<128x1xf32> to vector<128x32xf32>
    %32 = vector.extract_strided_slice %20 {offsets = [0, 1], sizes = [128, 1], strides = [1, 1]} : vector<128x3xf32> to vector<128x1xf32>
    %33 = vector.shape_cast %32 : vector<128x1xf32> to vector<128x1xf32>
    %34 = vector.broadcast %33 : vector<128x1xf32> to vector<128x32xf32>
    %35 = vector.extract_strided_slice %20 {offsets = [0, 2], sizes = [128, 1], strides = [1, 1]} : vector<128x3xf32> to vector<128x1xf32>
    %36 = vector.shape_cast %35 : vector<128x1xf32> to vector<128x1xf32>
    %37 = vector.broadcast %36 : vector<128x1xf32> to vector<128x32xf32>
    %38 = tpu.concatenate %31, %34, %37 in 1 : vector<128x32xf32>, vector<128x32xf32>, vector<128x32xf32> -> vector<128x96xf32>
    %c0_11 = arith.constant 0 : index
    %c0_12 = arith.constant 0 : index
    %39 = vector.load %arg2[%c0_11, %c0_12] : memref<128x96xf32, #tpu.memory_space<vmem>>, vector<128x96xf32>
    %40 = arith.mulf %39, %27 : vector<128x96xf32>
    %41 = arith.mulf %38, %28 : vector<128x96xf32>
    %42 = arith.addf %40, %41 : vector<128x96xf32>
    %43 = tpu.concatenate %25, %42 in 1 : vector<128x32xf32>, vector<128x96xf32> -> vector<128x128xf32>
    %44 = vector.shape_cast %43 : vector<128x128xf32> to vector<16x8x128xf32>
    %cst_13 = arith.constant dense<0.000000e+00> : vector<16x128xf32>
    %45 = vector.multi_reduction <add>, %44, %cst_13 [1] : vector<16x8x128xf32> to vector<16x128xf32>
    %c0_14 = arith.constant 0 : index
    %c0_15 = arith.constant 0 : index
    %46 = vector.load %arg7[%c0_14, %c0_15] : memref<16x128xf32, #tpu.memory_space<vmem>>, vector<16x128xf32>
    tpu.vector_store %arg7[%c0_14, %c0_15], %45 {strides = array<i32>} : memref<16x128xf32, #tpu.memory_space<vmem>>, vector<16x128xf32>,
    return
  }
  func.func @transform_0(%arg0: i32) -> (i32, i32) {
    %c0_i32 = arith.constant 0 : i32
    %c0_i32_0 = arith.constant 0 : i32
    return %arg0, %c0_i32 : i32, i32
  }
  func.func @transform_1(%arg0: i32) -> (i32, i32) {
    %c0_i32 = arith.constant 0 : i32
    %c0_i32_0 = arith.constant 0 : i32
    return %arg0, %c0_i32 : i32, i32
  }
  func.func @transform_2(%arg0: i32) -> (i32, i32) {
    %c0_i32 = arith.constant 0 : i32
    %c0_i32_0 = arith.constant 0 : i32
    %c0_i32_1 = arith.constant 0 : i32
    return %c0_i32, %c0_i32_0 : i32, i32
  }
  func.func @transform_3(%arg0: i32) -> (i32, i32) {
    %c0_i32 = arith.constant 0 : i32
    %c0_i32_0 = arith.constant 0 : i32
    %c0_i32_1 = arith.constant 0 : i32
    return %c0_i32, %c0_i32_0 : i32, i32
  }
  func.func @transform_4(%arg0: i32) -> (i32, i32) {
    %c0_i32 = arith.constant 0 : i32
    %c0_i32_0 = arith.constant 0 : i32
    %c0_i32_1 = arith.constant 0 : i32
    return %c0_i32, %c0_i32_0 : i32, i32
  }
  func.func @transform_5(%arg0: i32) -> (i32, i32) {
    %c0_i32 = arith.constant 0 : i32
    %c0_i32_0 = arith.constant 0 : i32
    %c0_i32_1 = arith.constant 0 : i32
    return %c0_i32, %c0_i32_0 : i32, i32
  }
  func.func @transform_6(%arg0: i32) -> (i32, i32) {
    %c0_i32 = arith.constant 0 : i32
    %c0_i32_0 = arith.constant 0 : i32
    return %arg0, %c0_i32 : i32, i32
  }
}

</mosaic_0001>

<bundles_post_ra>
// kernel: tpu_custom_call.1
= control target key start
LH: loop header
LB: loop body
LE: loop exit
PB: predicated region body
PF: predicated region fallthrough
CT: control target
= control target key end

     0   :  { %vm54_vm0 = vcmask 457728   ;;  %v1770_v5 = vmov 52   ;;  %s2769_s0 = inlined_call_operand.vmem [shape: f32[128,56], index: 0, kind: input, shape index: {}]   ;;  %s2770_s1 = inlined_call_operand.vmem [shape: f32[128,96], index: 1, kind: input, shape index: {}]   ;;  %s2771_s2 = inlined_call_operand.vmem [shape: f32[56,128], index: 2, kind: input, shape index: {}]   ;;  %s2772_s3 = inlined_call_operand.vmem [shape: f32[1,128], index: 3, kind: input, shape index: {}]   ;;  %s2773_s4 = inlined_call_operand.vmem [shape: f32[32,96], index: 4, kind: input, shape index: {}]   ;;  %s2774_s5 = inlined_call_operand.vmem [shape: f32[1,96], index: 5, kind: input, shape index: {}]   ;;  %s2775_s6 = inlined_call_operand.hbm [shape: f32[16,128], index: 6, kind: output, shape index: {}]  }
   0x1   :  { %v40_v0 = vld [vmem:[%s2771_s2] sm:$0xff]  ;;  %v41_v1 = vld [vmem:[%s2771_s2 + $0x8] sm:$0xff]  ;;  %v42_v2 = vld [vmem:[%s2771_s2 + $0x10] sm:$0xff]  ;;  %1665 = vset.pattern.permute.xlu1 %v1770_v5  ;;  %1664 = vset.pattern.permute.xlu0 %v1770_v5 }
   0x2   :  { %v1634_v3 = vpack.c.bf16 %v41_v1, %v40_v0  ;;  %v43_v4 = vld [vmem:[%s2771_s2 + $0x18] sm:$0xff]  ;;  %v44_v7 = vld [vmem:[%s2771_s2 + $0x20] sm:$0xff]  ;;  %v45_v8 = vld [vmem:[%s2771_s2 + $0x28] sm:$0xff] }
   0x3   :  { %v1638_v6 = vpack.c.bf16 %v43_v4, %v42_v2  ;;  %v1836_v9 = vld [vmem:[%s2769_s0] sm:$0xff]  ;;  %v1843_v10 = vld [vmem:[%s2769_s0 + $0x10] sm:$0xff]  ;;  %v1642_v11 = vpack.c.bf16 %v45_v8, %v44_v7  ;;  %v1850_v12 = vld [vmem:[%s2769_s0 + $0x18] sm:$0xff] }
   0x4   :  { %1635 = vmatprep.subr.bf16.mxu0 %v1634_v3  ;;  %1578 = vmatprep.mubr.msk.f32.mxu0 %vm54_vm0, %v1836_v9 }
   0x5   :  { %1637 = vmatpush3.bf16.msra.mxu0 %v1634_v3  ;;  %574 = vperm.xlu1 %1665, %v1843_v10  }
   0x6   :  { %1639 = vmatprep.subr.bf16.mxu0 %v1638_v6  ;;  %566 = vperm.xlu0 %1664, %v1836_v9  }
   0x7   :  { %11 = vsyncpa [#allocation3], 0  ;;  %v1855_v13 = vld [vmem:[%s2769_s0 + $0x8] sm:$0xff]  ;;  %v46_v14 = vld [vmem:[%s2771_s2 + $0x30] sm:$0xff]  ;;  %v1771_v27 = vmov 53   ;;  %v1772_v28 = vmov 54  }
   0x8   :  { %v1865_v15 = vld [vmem:[%s2769_s0 + $0x28] sm:$0xff]  ;;  %v1870_v16 = vld [vmem:[%s2769_s0 + $0x20] sm:$0xff]  ;;  %v1877_v17 = vld [vmem:[%s2769_s0 + $0x38] sm:$0xff]  ;;  %v1773_v29 = vmov 55   ;;  %vm371_vm1 = vcmask 261120   ;;  %vm853_vm2 = vcmask 523264  }
   0x9   :  { %1641 = vmatpush3.bf16.msra.mxu0 %v1638_v6  ;;  %578 = vperm.xlu1 %1665, %v1850_v12   ;;  %v1882_v18 = vld [vmem:[%s2769_s0 + $0x30] sm:$0xff]  ;;  %v1893_v19 = vld [vmem:[%s2769_s0 + $0x48] sm:$0xff]  ;;  %v32_v20 = vld [vmem:[%s2769_s0 + $0x40] sm:$0xff]  ;;  %s1775_s27 = smov 32   ;;  %vm1430_vm3 = vcmask 1041409   ;;  %vm1432_vm4 = vcmask 1042434  }
   0xa   :  { %1643 = vmatprep.subr.bf16.mxu0 %v1642_v11  ;;  %570 = vperm.xlu0 %1664, %v1855_v13   ;;  %v1906_v21 = vld [vmem:[%s2769_s0 + $0x58] sm:$0xff]  ;;  %v1911_v22 = vld [vmem:[%s2769_s0 + $0x50] sm:$0xff]  ;;  %v1922_v23 = vld [vmem:[%s2769_s0 + $0x68] sm:$0xff]  ;;  %vm1434_vm5 = vcmask 1043459   ;;  %vm1436_vm6 = vcmask 1044484   ;;  %vm1438_vm7 = vcmask 1045509  }
   0xb   :  { %v1927_v24 = vld [vmem:[%s2769_s0 + $0x60] sm:$0xff]  ;;  %v1937_v25 = vld [vmem:[%s2769_s0 + $0x78] sm:$0xff]  ;;  %v1942_v26 = vld [vmem:[%s2769_s0 + $0x70] sm:$0xff]  ;;  %vm1440_vm8 = vcmask 1046534   ;;  %vm1442_vm9 = vcmask 1047559  }
   0xc   :  { %v360_v30 = vld [vmem:[%s2773_s4] sm:$0xff]  ;;  %v361_v31 = vld [vmem:[%s2773_s4 + $0x8] sm:$0xff]  ;;  %v362_v33 = vld [vmem:[%s2773_s4 + $0x10] sm:$0xff] }
   0xd   :  { %1645 = vmatpush3.bf16.msra.mxu0 %v1642_v11  ;;  %586 = vperm.xlu1 %1665, %v1865_v15   ;;  %v1646_v32 = vpack.c.bf16 %v361_v31, %v360_v30  ;;  %v363_v34 = vld [vmem:[%s2773_s4 + $0x18] sm:$0xff]  ;;  %v2092_v11 = vld [vmem:[%s2772_s3] ss:$0 sm:$0xff]  ;;  %s1774_s3 = smov 96  }
   0xe   :  { %1576 = vmatprep.subr.mxu0 %v46_v14  ;;  %582 = vperm.xlu0 %1664, %v1870_v16   ;;  %v1650_v35 = vpack.c.bf16 %v363_v34, %v362_v33 }
   0xf   :  { %1647 = vmatprep.subr.bf16.mxu1 %v1646_v32 }
  0x10   :  { %1649 = vmatpush3.bf16.msra.mxu1 %v1646_v32 }
  0x11   :  { %1577 = vmatpush3.msra.mxu0 %v46_v14  ;;  %594 = vperm.xlu1 %1665, %v1877_v17  }
  0x12   :  { %1579 = vmatmul.mubr.msk.f32.vlgmr.msra.gmra.mrb[0].mxu0 %vm54_vm0, %v1855_v13  ;;  %590 = vperm.xlu0 %1664, %v1882_v18  }
  0x13   :  { %1581 = vmatprep.mubr.msk.f32.mxu0 %vm54_vm0, %v1843_v10  ;;  %1651 = vmatprep.subr.bf16.mxu1 %v1650_v35 }
  0x14   :  { %1653 = vmatpush3.bf16.msra.mxu1 %v1650_v35 }
  0x15   :  { %602 = vperm.xlu1 %1665, %v1893_v19  }
  0x16   :  { %1582 = vmatmul.mubr.msk.f32.gmra.mrb[2].mxu0 %vm54_vm0, %v1850_v12  ;;  %598 = vperm.xlu0 %1664, %v32_v20  }
  0x17   :  { %1584 = vmatprep.mubr.msk.f32.mxu0 %vm54_vm0, %v1870_v16 }
  0x19   :  { %610 = vperm.xlu1 %1665, %v1906_v21  }
  0x1a   :  { %1585 = vmatmul.mubr.msk.f32.gmra.mrb[4].mxu0 %vm54_vm0, %v1865_v15  ;;  %606 = vperm.xlu0 %1664, %v1911_v22  }
  0x1b   :  { %1587 = vmatprep.mubr.msk.f32.mxu0 %vm54_vm0, %v1882_v18 }
  0x1d   :  { %618 = vperm.xlu1 %1665, %v1922_v23  }
  0x1e   :  { %1588 = vmatmul.mubr.msk.f32.gmra.mrb[6].mxu0 %vm54_vm0, %v1877_v17  ;;  %614 = vperm.xlu0 %1664, %v1927_v24  }
  0x1f   :  { %1590 = vmatprep.mubr.msk.f32.mxu0 %vm54_vm0, %v32_v20 }
  0x21   :  { %626 = vperm.xlu1 %1665, %v1937_v25  }
  0x22   :  { %1591 = vmatmul.mubr.msk.f32.gmra.mrb[8].mxu0 %vm54_vm0, %v1893_v19  ;;  %622 = vperm.xlu0 %1664, %v1942_v26  }
  0x23   :  { %1593 = vmatprep.mubr.msk.f32.mxu0 %vm54_vm0, %v1911_v22 }
  0x25   :  { %1667 = vset.pattern.permute.xlu1 %v1771_v27 }
  0x26   :  { %1594 = vmatmul.mubr.msk.f32.gmra.mrb[10].mxu0 %vm54_vm0, %v1906_v21  ;;  %955 = vperm.xlu1 %1667, %v1855_v13  }
  0x27   :  { %1596 = vmatprep.mubr.msk.f32.mxu0 %vm54_vm0, %v1927_v24  ;;  %1666 = vset.pattern.permute.xlu0 %v1771_v27 }
  0x28   :  { %951 = vperm.xlu0 %1666, %v1836_v9  }
  0x2a   :  { %1597 = vmatmul.mubr.msk.f32.gmra.mrb[12].mxu0 %vm54_vm0, %v1922_v23  ;;  %959 = vperm.xlu1 %1667, %v1843_v10  }
  0x2b   :  { %1599 = vmatprep.mubr.msk.f32.mxu0 %vm54_vm0, %v1942_v26 }
  0x2c   :  { %963 = vperm.xlu0 %1666, %v1850_v12  }
  0x2e   :  { %1600 = vmatmul.mubr.msk.f32.gmra.mrb[14].mxu0 %vm54_vm0, %v1937_v25  ;;  %967 = vperm.xlu1 %1667, %v1870_v16  }
  0x30   :  { %971 = vperm.xlu0 %1666, %v1865_v15  }
  0x32   :  { %975 = vperm.xlu1 %1667, %v1882_v18  }
  0x34   :  { %979 = vperm.xlu0 %1666, %v1877_v17  }
  0x36   :  { %983 = vperm.xlu1 %1667, %v32_v20  }
  0x38   :  { %987 = vperm.xlu0 %1666, %v1893_v19  }
  0x3a   :  { %991 = vperm.xlu1 %1667, %v1911_v22  }
  0x3c   :  { %995 = vperm.xlu0 %1666, %v1906_v21  }
  0x3e   :  { %999 = vperm.xlu1 %1667, %v1927_v24  }
  0x40   :  { %1003 = vperm.xlu0 %1666, %v1922_v23  }
  0x42   :  { %1007 = vperm.xlu1 %1667, %v1942_v26  }
  0x44   :  { %1011 = vperm.xlu0 %1666, %v1937_v25  }
  0x46   :  { %1668 = vset.pattern.permute.xlu1 %v1772_v28 }
  0x47   :  { %1015 = vperm.xlu1 %1668, %v1836_v9  }
  0x48   :  { %1669 = vset.pattern.permute.xlu0 %v1772_v28 }
  0x49   :  { %1019 = vperm.xlu0 %1669, %v1855_v13  }
  0x4b   :  { %1023 = vperm.xlu1 %1668, %v1843_v10  }
  0x4d   :  { %1051 = vperm.xlu0 %1669, %v1893_v19  }
  0x4f   :  { %1047 = vperm.xlu1 %1668, %v32_v20  }
  0x51   :  { %1059 = vperm.xlu0 %1669, %v1906_v21  }
  0x53   :  { %1055 = vperm.xlu1 %1668, %v1911_v22  }
  0x55   :  { %1031 = vperm.xlu0 %1669, %v1870_v16  }
  0x57   :  { %1670 = vset.pattern.permute.xlu1 %v1773_v29 }
  0x58   :  { %1083 = vperm.xlu1 %1670, %v1855_v13  }
  0x59   :  { %1067 = vperm.xlu0 %1669, %v1922_v23  }
  0x5c   :  { %1111 = vperm.xlu1 %1670, %v32_v20  }
  0x5d   :  { %1039 = vperm.xlu0 %1669, %v1882_v18  }
  0x60   :  { %1671 = vset.pattern.permute.xlu1 %v1772_v28 }
  0x61   :  { %1027 = vperm.xlu1 %1671, %v1850_v12   ;;  %1075 = vperm.xlu0 %1669, %v1937_v25  }
  0x65   :  { %1672 = vset.pattern.permute.xlu1 %v1773_v29  ;;  %1680 = vset.pattern.permute.xlu0 %v1773_v29 }
  0x66   :  { %1087 = vperm.xlu1 %1672, %v1843_v10   ;;  %1079 = vperm.xlu0 %1680, %v1836_v9  }
  0x6a   :  { %1119 = vperm.xlu1 %1672, %v1911_v22   ;;  %1115 = vperm.xlu0 %1680, %v1893_v19  }
  0x6e   :  { %1673 = vset.pattern.permute.xlu1 %v1772_v28  ;;  %1091 = vperm.xlu0 %1680, %v1850_v12  }
  0x6f   :  { %1063 = vperm.xlu1 %1673, %v1927_v24  }
  0x72   :  { %1099 = vperm.xlu0 %1680, %v1865_v15  }
  0x73   :  { %1674 = vset.pattern.permute.xlu1 %v1773_v29 }
  0x74   :  { %1123 = vperm.xlu1 %1674, %v1906_v21  }
  0x78   :  { %1675 = vset.pattern.permute.xlu1 %v1772_v28 }
  0x79   :  { %1035 = vperm.xlu1 %1675, %v1865_v15  }
  0x7d   :  { %1676 = vset.pattern.permute.xlu1 %v1773_v29 }
  0x7e   :  { %1095 = vperm.xlu1 %1676, %v1870_v16  }
  0x82   :  { %1127 = vperm.xlu1 %1676, %v1927_v24  }
  0x84   :  { %v2010_v36 = vpop.permute.xlu1 %574 }
  0x85   :  { %v567_v38 = vpop.permute.xlu0 %566 }
  0x86   :  { %1677 = vset.pattern.permute.xlu1 %v1772_v28 }
  0x87   :  { %1071 = vperm.xlu1 %1677, %v1942_v26  }
  0x88   :  { %v2013_v37 = vpop.permute.xlu1 %578 }
  0x89   :  { %v571_v40 = vpop.permute.xlu0 %570 }
  0x8b   :  { %1678 = vset.pattern.permute.xlu1 %v1773_v29 }
  0x8c   :  { %1131 = vperm.xlu1 %1678, %v1922_v23   ;;  %v2016_v39 = vpop.permute.xlu1 %586 }
  0x8d   :  { %v2021_v42 = vpop.permute.xlu0 %582 }
  0x90   :  { %1679 = vset.pattern.permute.xlu1 %v1772_v28  ;;  %v2018_v41 = vpop.permute.xlu1 %594 }
  0x91   :  { %1043 = vperm.xlu1 %1679, %v1877_v17   ;;  %v2028_v45 = vpop.permute.xlu0 %590 }
  0x94   :  { %v2023_v43 = vpop.permute.xlu1 %602 }
  0x95   :  { %1681 = vset.pattern.permute.xlu1 %v1773_v29  ;;  %v2033_v47 = vpop.permute.xlu0 %598 }
  0x96   :  { %1103 = vperm.xlu1 %1681, %v1882_v18  }
  0x98   :  { %v2026_v44 = vpop.permute.xlu1 %610 }
  0x99   :  { %v2039_v50 = vpop.permute.xlu0 %606 }
  0x9a   :  { %1135 = vperm.xlu1 %1681, %v1942_v26  }
  0x9c   :  { %v2031_v46 = vpop.permute.xlu1 %618 }
  0x9d   :  { %v2043_v52 = vpop.permute.xlu0 %614 }
  0xa0   :  { %v2035_v48 = vpop.permute.xlu1 %626 }
  0xa1   :  { %v2049_v55 = vpop.permute.xlu0 %622 }
  0xa5   :  { %v2037_v49 = vpop.permute.xlu1 %955 }
  0xa7   :  { %v2053_v57 = vpop.permute.xlu0 %951 }
  0xa9   :  { %v2041_v51 = vpop.permute.xlu1 %959 }
  0xab   :  { %v2059_v60 = vpop.permute.xlu0 %963 }
  0xad   :  { %v2045_v53 = vpop.permute.xlu1 %967 }
  0xaf   :  { %v2063_v62 = vpop.permute.xlu0 %971 }
  0xb1   :  { %v2047_v54 = vpop.permute.xlu1 %975 }
  0xb3   :  { %v2067_v0 = vpop.permute.xlu0 %979 }
  0xb4   :  { %2782 = vst [vmem:[#allocation6_spill] sm:$0xff] %v2067_v0 }
  0xb5   :  { %v2051_v56 = vpop.permute.xlu1 %983 }
  0xb7   :  { %v2073_v3 = vpop.permute.xlu0 %987 }
  0xb9   :  { %v2055_v58 = vpop.permute.xlu1 %991 }
  0xbb   :  { %v2077_v5 = vpop.permute.xlu0 %995 }
  0xbd   :  { %v2057_v59 = vpop.permute.xlu1 %999 }
  0xbf   :  { %v2083_v8 = vpop.permute.xlu0 %1003 }
  0xc1   :  { %v2061_v61 = vpop.permute.xlu1 %1007 }
  0xc2   :  { %2781 = vst [vmem:[#allocation5_spill] sm:$0xff] %v2061_v61 }
  0xc3   :  { %v2087_v10 = vpop.permute.xlu0 %1011 }
  0xc4   :  { %2783 = vst [vmem:[#allocation7_spill] sm:$0xff] %v2087_v10 }
  0xc6   :  { %v2065_v63 = vpop.permute.xlu1 %1015 }
  0xc8   :  { %v2102_v18 = vpop.permute.xlu0 %1019 }
  0xca   :  { %v2069_v1 = vpop.permute.xlu1 %1023 }
  0xcc   :  { %v2124_v34 = vpop.permute.xlu0 %1051 }
  0xce   :  { %v2071_v2 = vpop.permute.xlu1 %1047 }
  0xd2   :  { %v2075_v4 = vpop.permute.xlu1 %1055 }
  0xd7   :  { %v2079_v6 = vpop.permute.xlu1 %1083 }
  0xdb   :  { %v2081_v7 = vpop.permute.xlu1 %1111 }
  0xe0   :  { %v2085_v9 = vpop.permute.xlu1 %1027 }
  0xe5   :  { %v1580_v12 = vpop.f32.mrb[0].mxu0  ;;  %v2094_v13 = vpop.permute.xlu1 %1087 }
  0xe6   :  { %v2097_v14 = vadd.f32 %v1580_v12, %v2092_v11  ;;  %v169_v15 = vpop.f32.mrb[1].mxu0 }
  0xe7   :  { %v2100_v16 = vadd.f32 %v2092_v11, %v169_v15 }
  0xe8   :  { %v1489_v19 = vmul.f32 -1.442695, %v2097_v14  ;;  %v630_v20 = vmul.f32 %v571_v40, %v2097_v14 }
  0xe9   :  { %v1488_v21 = vmul.f32 -1.442695, %v2100_v16  ;;  %v1583_v22 = vpop.f32.mrb[2].mxu0  ;;  %v629_v23 = vmul.f32 %v567_v38, %v2100_v16  ;;  %v2108_v24 = vpop.permute.xlu1 %1119 }
  0xea   :  { %1682 = vpow2.f32 %v1489_v19  ;;  %v2111_v26 = vadd.f32 %v1583_v22, %v2092_v11  ;;  %663 = vrot.lane.b32.xlu1 %v630_v20, %s1774_s3  ;;  %v179_v27 = vpop.f32.mrb[3].mxu0 }
  0xeb   :  { %1684 = vpow2.f32 %v1488_v21  ;;  %v2115_v28 = vadd.f32 %v2092_v11, %v179_v27  ;;  %661 = vrot.lane.b32.xlu0 %v629_v23, %s1774_s3 }
  0xec   :  { %v1491_v29 = vmul.f32 -1.442695, %v2111_v26  ;;  %v632_v30 = vmul.f32 %v2013_v37, %v2111_v26 }
  0xed   :  { %v1490_v31 = vmul.f32 -1.442695, %v2115_v28  ;;  %v1586_v32 = vpop.f32.mrb[4].mxu0  ;;  %v631_v33 = vmul.f32 %v2010_v36, %v2115_v28 }
  0xee   :  { %1686 = vpow2.f32 %v1491_v29  ;;  %v2127_v35 = vadd.f32 %v1586_v32, %v2092_v11  ;;  %v189_v38 = vpop.f32.mrb[5].mxu0  ;;  %667 = vrot.lane.b32.xlu1 %v632_v30, %s1774_s3  ;;  %v2130_v40 = vpop.permute.xlu1 %1063 }
  0xef   :  { %1688 = vpow2.f32 %v1490_v31  ;;  %v2133_v37 = vadd.f32 %v2092_v11, %v189_v38  ;;  %665 = vrot.lane.b32.xlu0 %v631_v33, %s1774_s3  ;;  %v2155_v30 = vpop.permute.xlu0 %1059 }
  0xf0   :  { %v1493_v12 = vmul.f32 -1.442695, %v2127_v35  ;;  %v634_v36 = vmul.f32 %v2016_v39, %v2127_v35 }
  0xf1   :  { %v1492_v15 = vmul.f32 -1.442695, %v2133_v37  ;;  %v1589_v19 = vpop.f32.mrb[6].mxu0  ;;  %v633_v20 = vmul.f32 %v2021_v42, %v2133_v37 }
  0xf2   :  { %1690 = vpow2.f32 %v1493_v12  ;;  %v2143_v21 = vadd.f32 %v1589_v19, %v2092_v11  ;;  %v199_v22 = vpop.f32.mrb[7].mxu0  ;;  %671 = vrot.lane.b32.xlu1 %v634_v36, %s1774_s3 }
  0xf3   :  { %1692 = vpow2.f32 %v1492_v15  ;;  %v2147_v23 = vadd.f32 %v2092_v11, %v199_v22  ;;  %669 = vrot.lane.b32.xlu0 %v633_v20, %s1774_s3  ;;  %v2150_v39 = vpop.permute.xlu1 %1123 }
  0xf4   :  { %v1683_v27 = vpop.eup %1682  ;;  %v1495_v29 = vmul.f32 -1.442695, %v2143_v21  ;;  %v636_v42 = vmul.f32 %v2018_v41, %v2143_v21 }
  0xf5   :  { %v1685_v31 = vpop.eup %1684  ;;  %v297_v32 = vadd.f32 1.0, %v1683_v27  ;;  %v1494_v33 = vmul.f32 -1.442695, %v2147_v23  ;;  %v1592_v38 = vpop.f32.mrb[8].mxu0  ;;  %v635_v12 = vmul.f32 %v2028_v45, %v2147_v23 }
  0xf6   :  { %v296_v36 = vadd.f32 1.0, %v1685_v31  ;;  %1694 = vpow2.f32 %v1495_v29  ;;  %v2161_v15 = vadd.f32 %v1592_v38, %v2092_v11  ;;  %v209_v19 = vpop.f32.mrb[9].mxu0  ;;  %675 = vrot.lane.b32.xlu1 %v636_v42, %s1774_s3 }
  0xf7   :  { %1696 = vrcp.f32 %v297_v32  ;;  %v2165_v41 = vadd.f32 %v2092_v11, %v209_v19  ;;  %673 = vrot.lane.b32.xlu0 %v635_v12, %s1774_s3 }
  0xf8   :  { %v1687_v20 = vpop.eup %1686  ;;  %1698 = vrcp.f32 %v296_v36  ;;  %v1497_v22 = vmul.f32 -1.442695, %v2161_v15  ;;  %v638_v45 = vmul.f32 %v2023_v43, %v2161_v15  ;;  %v2171_v27 = vpop.permute.xlu1 %1035 }
  0xf9   :  { %v1689_v29 = vpop.eup %1688  ;;  %v299_v31 = vadd.f32 1.0, %v1687_v20  ;;  %1700 = vpow2.f32 %v1494_v33  ;;  %v1496_v42 = vmul.f32 -1.442695, %v2165_v41  ;;  %v1595_v32 = vpop.f32.mrb[10].mxu0  ;;  %v637_v38 = vmul.f32 %v2033_v47, %v2165_v41 }
  0xfa   :  { %v298_v19 = vadd.f32 1.0, %v1689_v29  ;;  %1702 = vpow2.f32 %v1497_v22  ;;  %v2177_v12 = vadd.f32 %v1595_v32, %v2092_v11  ;;  %v219_v36 = vpop.f32.mrb[11].mxu0  ;;  %679 = vrot.lane.b32.xlu1 %v638_v45, %s1774_s3  ;;  %v1032_v43 = vpop.permute.xlu0 %1031 }
  0xfb   :  { %1704 = vrcp.f32 %v299_v31  ;;  %v2181_v20 = vadd.f32 %v2092_v11, %v219_v36  ;;  %677 = vrot.lane.b32.xlu0 %v637_v38, %s1774_s3  ;;  %v1146_v47 = vsel %vm371_vm1, %v2045_v53, %v1032_v43 }
  0xfc   :  { %v1691_v33 = vpop.eup %1690  ;;  %1706 = vrcp.f32 %v298_v19  ;;  %v1499_v22 = vmul.f32 -1.442695, %v2177_v12  ;;  %v640_v29 = vmul.f32 %v2026_v44, %v2177_v12 }
  0xfd   :  { %v1693_v32 = vpop.eup %1692  ;;  %v301_v45 = vadd.f32 1.0, %v1691_v33  ;;  %1708 = vpow2.f32 %v1496_v42  ;;  %v1498_v31 = vmul.f32 -1.442695, %v2181_v20  ;;  %v1598_v36 = vpop.f32.mrb[12].mxu0  ;;  %v639_v38 = vmul.f32 %v2039_v50, %v2181_v20 }
  0xfe   :  { %v1096_v0 = vpop.permute.xlu1 %1095  ;;  %v300_v10 = vadd.f32 1.0, %v1693_v32  ;;  %1710 = vpow2.f32 %v1499_v22  ;;  %v2193_v53 = vadd.f32 %v1598_v36, %v2092_v11  ;;  %v229_v19 = vpop.f32.mrb[13].mxu0  ;;  %683 = vrot.lane.b32.xlu1 %v640_v29, %s1774_s3 }
  0xff   :  { %v2197_v44 = vsel %vm853_vm2, %v1146_v47, %v1096_v0  ;;  %1712 = vrcp.f32 %v301_v45  ;;  %v2200_v42 = vadd.f32 %v2092_v11, %v229_v19  ;;  %681 = vrot.lane.b32.xlu0 %v639_v38, %s1774_s3 }
 0x100   :  { %v1695_v43 = vpop.eup %1694  ;;  %1714 = vrcp.f32 %v300_v10  ;;  %v1501_v50 = vmul.f32 -1.442695, %v2193_v53  ;;  %v642_v33 = vmul.f32 %v2031_v46, %v2193_v53 }
 0x101   :  { %v1697_v22 = vpop.eup %1696  ;;  %v303_v32 = vadd.f32 1.0, %v1695_v43  ;;  %1716 = vpow2.f32 %v1498_v31  ;;  %v1500_v29 = vmul.f32 -1.442695, %v2200_v42  ;;  %v1601_v0 = vpop.f32.mrb[14].mxu0  ;;  %v641_v47 = vmul.f32 %v2043_v52, %v2200_v42 }
 0x102   :  { %v2209_v45 = vpop.permute.xlu1 %1127  ;;  %v1699_v36 = vpop.eup %1698  ;;  %1718 = vpow2.f32 %v1501_v50  ;;  %v2212_v10 = vadd.f32 %v1601_v0, %v2092_v11  ;;  %687 = vrot.lane.b32.xlu1 %v642_v33, %s1774_s3  ;;  %v345_v19 = vmul.f32 %v1697_v22, %v2097_v14 }
 0x103   :  { %2784 = vst [vmem:[#allocation8_spill] sm:$0xff] %v2209_v45  ;;  %v239_v38 = vpop.f32.mrb[15].mxu0  ;;  %v1701_v46 = vpop.eup %1700  ;;  %v344_v43 = vmul.f32 %v1699_v36, %v2100_v16  ;;  %685 = vrot.lane.b32.xlu0 %v641_v47, %s1774_s3  ;;  %1720 = vpow2.f32 %v1500_v29 }
 0x104   :  { %v2217_v31 = vadd.f32 %v2092_v11, %v239_v38  ;;  %v1703_v52 = vpop.eup %1702  ;;  %v302_v61 = vadd.f32 1.0, %v1701_v46  ;;  %v1503_v50 = vmul.f32 -1.442695, %v2212_v10  ;;  %v644_v0 = vmul.f32 %v2035_v48, %v2212_v10 }
 0x105   :  { %v1705_v45 = vpop.eup %1704  ;;  %1722 = vrcp.f32 %v303_v32  ;;  %v305_v33 = vadd.f32 1.0, %v1703_v52  ;;  %1610 = vmatprep.mubr.msk.f32.mxu1 %vm371_vm1, %v344_v43 }
 0x106   :  { %v1502_v14 = vmul.f32 -1.442695, %v2217_v31  ;;  %v643_v11 = vmul.f32 %v2049_v55, %v2217_v31  ;;  %v1707_v16 = vpop.eup %1706  ;;  %1724 = vrcp.f32 %v302_v61  ;;  %1611 = vmatmul.mubr.msk.f32.vlgmr.msra.gmra.mrb[0].mxu1 %vm371_vm1, %v345_v19  ;;  %691 = vrot.lane.b32.xlu1 %v644_v0, %s1774_s3  ;;  %v2230_v22 = vpop.permute.xlu1 %1071  ;;  %v347_v47 = vmul.f32 %v1705_v45, %v2111_v26 }
 0x107   :  { %v1709_v29 = vpop.eup %1708  ;;  %v346_v48 = vmul.f32 %v1707_v16, %v2115_v28  ;;  %1726 = vrcp.f32 %v305_v33  ;;  %v1068_v55 = vpop.permute.xlu0 %1067 }
 0x108   :  { %689 = vrot.lane.b32.xlu0 %v643_v11, %s1774_s3  ;;  %v1711_v32 = vpop.eup %1710  ;;  %v304_v36 = vadd.f32 1.0, %v1709_v29  ;;  %1728 = vpow2.f32 %v1503_v50  ;;  %v1155_v46 = vsel %vm371_vm1, %v2083_v8, %v1068_v55 }
 0x109   :  { %v1713_v38 = vpop.eup %1712  ;;  %v307_v61 = vadd.f32 1.0, %v1711_v32  ;;  %1730 = vpow2.f32 %v1502_v14  ;;  %1613 = vmatprep.mubr.msk.f32.mxu1 %vm371_vm1, %v346_v48 }
 0x10a   :  { %v1715_v19 = vpop.eup %1714  ;;  %1732 = vrcp.f32 %v304_v36  ;;  %1614 = vmatmul.mubr.msk.f32.gmra.mrb[2].mxu1 %vm371_vm1, %v347_v47  ;;  %v349_v52 = vmul.f32 %v1713_v38, %v2127_v35 }
 0x10b   :  { %v1717_v28 = vpop.eup %1716  ;;  %v348_v43 = vmul.f32 %v1715_v19, %v2133_v37  ;;  %1734 = vrcp.f32 %v307_v61  ;;  %v1132_v26 = vpop.permute.xlu1 %1131 }
 0x10c   :  { %v1719_v45 = vpop.eup %1718  ;;  %v306_v50 = vadd.f32 1.0, %v1717_v28  ;;  %v2242_v0 = vsel %vm853_vm2, %v1155_v46, %v1132_v26  ;;  %v1040_v47 = vpop.permute.xlu0 %1039 }
 0x10d   :  { %v309_v33 = vadd.f32 1.0, %v1719_v45  ;;  %1616 = vmatprep.mubr.msk.f32.mxu1 %vm371_vm1, %v348_v43  ;;  %v1721_v8 = vpop.eup %1720  ;;  %v1148_v38 = vsel %vm371_vm1, %v2047_v54, %v1040_v47 }
 0x10e   :  { %1736 = vrcp.f32 %v306_v50  ;;  %1617 = vmatmul.mubr.msk.f32.gmra.mrb[4].mxu1 %vm371_vm1, %v349_v52  ;;  %v308_v11 = vadd.f32 1.0, %v1721_v8 }
 0x10f   :  { %v1723_v14 = vpop.eup %1722  ;;  %1738 = vrcp.f32 %v309_v33 }
 0x110   :  { %v1725_v37 = vpop.eup %1724  ;;  %v2246_v16 = vpop.permute.xlu1 %1043  ;;  %1740 = vrcp.f32 %v308_v11  ;;  %v351_v32 = vmul.f32 %v1723_v14, %v2143_v21 }
 0x111   :  { %2785 = vst [vmem:[#allocation9_spill] sm:$0xff] %v2246_v16  ;;  %v1727_v29 = vpop.eup %1726  ;;  %v350_v35 = vmul.f32 %v1725_v37, %v2147_v23 }
 0x112   :  { %v1729_v48 = vpop.eup %1728  ;;  %v353_v46 = vmul.f32 %v1727_v29, %v2161_v15 }
 0x113   :  { %v1731_v36 = vpop.eup %1730  ;;  %v311_v55 = vadd.f32 1.0, %v1729_v48  ;;  %1619 = vmatprep.mubr.msk.f32.mxu1 %vm371_vm1, %v350_v35 }
 0x114   :  { %v1733_v61 = vpop.eup %1732  ;;  %v310_v19 = vadd.f32 1.0, %v1731_v36  ;;  %1620 = vmatmul.mubr.msk.f32.gmra.mrb[6].mxu1 %vm371_vm1, %v351_v32 }
 0x115   :  { %v1735_v28 = vpop.eup %1734  ;;  %v352_v23 = vmul.f32 %v1733_v61, %v2165_v41  ;;  %1742 = vrcp.f32 %v311_v55  ;;  %v1104_v43 = vpop.permute.xlu1 %1103 }
 0x116   :  { %1744 = vrcp.f32 %v310_v19  ;;  %v2257_v21 = vsel %vm853_vm2, %v1148_v38, %v1104_v43  ;;  %v355_v54 = vmul.f32 %v1735_v28, %v2177_v12 }
 0x117   :  { %1622 = vmatprep.mubr.msk.f32.mxu1 %vm371_vm1, %v352_v23 }
 0x118   :  { %v1737_v26 = vpop.eup %1736  ;;  %1623 = vmatmul.mubr.msk.f32.gmra.mrb[8].mxu1 %vm371_vm1, %v353_v46 }
 0x119   :  { %v1739_v15 = vpop.eup %1738  ;;  %v354_v45 = vmul.f32 %v1737_v26, %v2181_v20  ;;  %v2273_v20 = vpop.permute.xlu0 %1075 }
 0x11a   :  { %v1741_v52 = vpop.eup %1740  ;;  %v357_v41 = vmul.f32 %v1739_v15, %v2193_v53  ;;  %2786 = vst [vmem:[#allocation10_spill] sm:$0xff] %v2273_v20  ;;  %v2281_v37 = vpop.permute.xlu1 %1135 }
 0x11b   :  { %1625 = vmatprep.mubr.msk.f32.mxu1 %vm371_vm1, %v354_v45  ;;  %v356_v50 = vmul.f32 %v1741_v52, %v2200_v42  ;;  %2787 = vst [vmem:[#allocation11_spill] sm:$0xff] %v2281_v37 }
 0x11c   :  { %1626 = vmatmul.mubr.msk.f32.gmra.mrb[10].mxu1 %vm371_vm1, %v355_v54 }
 0x11d   :  { %1628 = vmatprep.mubr.msk.f32.mxu1 %vm371_vm1, %v356_v50  ;;  %v2275_v53 = vpop.permute.xlu0 %1079 }
 0x11f   :  { %v1743_v33 = vpop.eup %1742 }
 0x120   :  { %v1745_v8 = vpop.eup %1744  ;;  %v359_v12 = vmul.f32 %v1743_v33, %v2212_v10  ;;  %1629 = vmatmul.mubr.msk.f32.gmra.mrb[12].mxu1 %vm371_vm1, %v357_v41  ;;  %v2288_v10 = vld [vmem:[%s2774_s5] ss:$0 sm:$0xff]  ;;  %s1776_s5 = smov 64  }
 0x121   :  { %v358_v14 = vmul.f32 %v1745_v8, %v2217_v31  ;;  %v2277_v42 = vpop.permute.xlu0 %1115 }
 0x123   :  { %1631 = vmatprep.mubr.msk.f32.mxu1 %vm371_vm1, %v358_v14 }
 0x124   :  { %1632 = vmatmul.mubr.msk.f32.gmra.mrb[14].mxu1 %vm371_vm1, %v359_v12 }
 0x125   :  { %v2279_v11 = vpop.permute.xlu0 %1091 }
 0x129   :  { %v2283_v29 = vpop.permute.xlu0 %1099 }
 0x15c   :  { %v664_v32 = vpop.permute.xlu1 %663 }
 0x15d   :  { %v662_v36 = vpop.permute.xlu0 %661 }
 0x160   :  { %v668_v26 = vpop.permute.xlu1 %667 }
 0x161   :  { %v666_v15 = vpop.permute.xlu0 %665 }
 0x1d9   :  { %v1612_v31 = vpop.f32.mrb[0].mxu1 }
 0x1da   :  { %v492_v35 = vadd.f32 %v1612_v31, %v2288_v10  ;;  %v486_v48 = vpop.f32.mrb[1].mxu1 }
 0x1db   :  { %v487_v47 = vadd.f32 %v2288_v10, %v486_v48 }
 0x1dc   :  { %v2292_v55 = vmul.f32 %v664_v32, %v492_v35  ;;  %v672_v35 = vpop.permute.xlu1 %671  ;;  %v670_v32 = vpop.permute.xlu0 %669 }
 0x1dd   :  { %v2294_v38 = vmul.f32 %v662_v36, %v487_v47  ;;  %v1615_v61 = vpop.f32.mrb[2].mxu1 }
 0x1de   :  { %743 = vrot.lane.b32.xlu1 %v2292_v55, %s1775_s27  ;;  %v496_v46 = vpop.f32.mrb[3].mxu1  ;;  %v502_v23 = vadd.f32 %v1615_v61, %v2288_v10 }
 0x1df   :  { %741 = vrot.lane.b32.xlu0 %v2294_v38, %s1775_s27  ;;  %v497_v43 = vadd.f32 %v2288_v10, %v496_v46 }
 0x1e0   :  { %v2310_v45 = vmul.f32 %v668_v26, %v502_v23 }
 0x1e1   :  { %v1618_v19 = vpop.f32.mrb[4].mxu1  ;;  %v2312_v41 = vmul.f32 %v666_v15, %v497_v43 }
 0x1e2   :  { %791 = vrot.lane.b32.xlu1 %v2292_v55, %s1776_s5  ;;  %v506_v28 = vpop.f32.mrb[5].mxu1  ;;  %v512_v12 = vadd.f32 %v1618_v19, %v2288_v10 }
 0x1e3   :  { %789 = vrot.lane.b32.xlu0 %v2294_v38, %s1776_s5  ;;  %v507_v31 = vadd.f32 %v2288_v10, %v506_v28 }
 0x1e4   :  { %v2328_v47 = vmul.f32 %v672_v35, %v512_v12  ;;  %v674_v35 = vpop.permute.xlu0 %673 }
 0x1e5   :  { %v2331_v46 = vmul.f32 %v670_v32, %v507_v31  ;;  %v676_v31 = vpop.permute.xlu1 %675 }
 0x1e6   :  { %872 = vrot.lane.b32.xlu1 %v2292_v55, %s1774_s3 }
 0x1e7   :  { %v1621_v54 = vpop.f32.mrb[6].mxu1  ;;  %870 = vrot.lane.b32.xlu0 %v2294_v38, %s1774_s3 }
 0x1e8   :  { %v516_v52 = vpop.f32.mrb[7].mxu1  ;;  %v522_v15 = vadd.f32 %v1621_v54, %v2288_v10 }
 0x1e9   :  { %v517_v12 = vadd.f32 %v2288_v10, %v516_v52 }
 0x1ea   :  { %747 = vrot.lane.b32.xlu1 %v2310_v45, %s1775_s27 }
 0x1eb   :  { %v1624_v50 = vpop.f32.mrb[8].mxu1  ;;  %745 = vrot.lane.b32.xlu0 %v2312_v41, %s1775_s27  ;;  %v2352_v32 = vmul.f32 %v674_v35, %v517_v12 }
 0x1ec   :  { %v526_v33 = vpop.f32.mrb[9].mxu1  ;;  %v532_v54 = vadd.f32 %v1624_v50, %v2288_v10 }
 0x1ed   :  { %v527_v52 = vadd.f32 %v2288_v10, %v526_v33 }
 0x1ee   :  { %795 = vrot.lane.b32.xlu1 %v2310_v45, %s1776_s5 }
 0x1ef   :  { %v1627_v8 = vpop.f32.mrb[10].mxu1  ;;  %793 = vrot.lane.b32.xlu0 %v2312_v41, %s1776_s5 }
 0x1f0   :  { %v536_v14 = vpop.f32.mrb[11].mxu1  ;;  %v542_v50 = vadd.f32 %v1627_v8, %v2288_v10 }
 0x1f1   :  { %v537_v33 = vadd.f32 %v2288_v10, %v536_v14 }
 0x1f2   :  { %876 = vrot.lane.b32.xlu1 %v2310_v45, %s1774_s3 }
 0x1f3   :  { %v1630_v48 = vpop.f32.mrb[12].mxu1  ;;  %874 = vrot.lane.b32.xlu0 %v2312_v41, %s1774_s3 }
 0x1f4   :  { %v552_v36 = vadd.f32 %v1630_v48, %v2288_v10  ;;  %v546_v61 = vpop.f32.mrb[13].mxu1  ;;  %v2350_v48 = vmul.f32 %v676_v31, %v522_v15 }
 0x1f5   :  { %v547_v19 = vadd.f32 %v2288_v10, %v546_v61  ;;  %v680_v61 = vpop.permute.xlu1 %679 }
 0x1f6   :  { %751 = vrot.lane.b32.xlu1 %v2328_v47, %s1775_s27 }
 0x1f7   :  { %v1633_v28 = vpop.f32.mrb[14].mxu1  ;;  %749 = vrot.lane.b32.xlu0 %v2331_v46, %s1775_s27 }
 0x1f8   :  { %v562_v23 = vadd.f32 %v1633_v28, %v2288_v10  ;;  %v556_v43 = vpop.f32.mrb[15].mxu1  ;;  %v678_v28 = vpop.permute.xlu0 %677 }
 0x1f9   :  { %v557_v26 = vadd.f32 %v2288_v10, %v556_v43  ;;  %v2368_v43 = vmul.f32 %v680_v61, %v532_v54  ;;  %v2370_v15 = vmul.f32 %v678_v28, %v527_v52  ;;  %v684_v12 = vpop.permute.xlu1 %683 }
 0x1fa   :  { %799 = vrot.lane.b32.xlu1 %v2328_v47, %s1776_s5  ;;  %v2386_v35 = vmul.f32 %v684_v12, %v542_v50  ;;  %v1143_v12 = vsel %vm371_vm1, %v2037_v49, %v2102_v18  ;;  %v1174_v49 = vld [vmem:[%s2770_s1] sm:$0xff] }
 0x1fb   :  { %797 = vrot.lane.b32.xlu0 %v2331_v46, %s1776_s5 }
 0x1fc   :  { %v682_v31 = vpop.permute.xlu0 %681 }
 0x1fd   :  { %v2388_v54 = vmul.f32 %v682_v31, %v537_v33  ;;  %v688_v10 = vpop.permute.xlu1 %687 }
 0x1fe   :  { %880 = vrot.lane.b32.xlu1 %v2328_v47, %s1774_s3  ;;  %v2402_v14 = vmul.f32 %v688_v10, %v552_v36  ;;  %v1142_v10 = vsel %vm371_vm1, %v2053_v57, %v2065_v63 }
 0x1ff   :  { %878 = vrot.lane.b32.xlu0 %v2331_v46, %s1774_s3 }
 0x200   :  { %v686_v8 = vpop.permute.xlu0 %685 }
 0x201   :  { %v2404_v52 = vmul.f32 %v686_v8, %v547_v19  ;;  %v692_v61 = vpop.permute.xlu1 %691 }
 0x202   :  { %755 = vrot.lane.b32.xlu1 %v2350_v48, %s1775_s27  ;;  %v2418_v19 = vmul.f32 %v692_v61, %v562_v23 }
 0x203   :  { %753 = vrot.lane.b32.xlu0 %v2352_v32, %s1775_s27 }
 0x204   :  { %v690_v36 = vpop.permute.xlu0 %689  ;;  %2788 = vst [vmem:[#allocation12_spill] sm:$0xff] %v2418_v19 }
 0x205   :  { %v2420_v28 = vmul.f32 %v690_v36, %v557_v26  ;;  %v1159_v36 = vsel %vm853_vm2, %v1143_v12, %v2079_v6 }
 0x206   :  { %803 = vrot.lane.b32.xlu1 %v2350_v48, %s1776_s5 }
 0x207   :  { %801 = vrot.lane.b32.xlu0 %v2352_v32, %s1776_s5  ;;  %2789 = vst [vmem:[#allocation13_spill] sm:$0xff] %v2420_v28 }
 0x20a   :  { %884 = vrot.lane.b32.xlu1 %v2350_v48, %s1774_s3 }
 0x20b   :  { %882 = vrot.lane.b32.xlu0 %v2352_v32, %s1774_s3 }
 0x20e   :  { %759 = vrot.lane.b32.xlu1 %v2368_v43, %s1775_s27 }
 0x20f   :  { %757 = vrot.lane.b32.xlu0 %v2370_v15, %s1775_s27 }
 0x212   :  { %807 = vrot.lane.b32.xlu1 %v2368_v43, %s1776_s5 }
 0x213   :  { %805 = vrot.lane.b32.xlu0 %v2370_v15, %s1776_s5 }
 0x216   :  { %888 = vrot.lane.b32.xlu1 %v2368_v43, %s1774_s3 }
 0x217   :  { %886 = vrot.lane.b32.xlu0 %v2370_v15, %s1774_s3 }
 0x21a   :  { %763 = vrot.lane.b32.xlu1 %v2386_v35, %s1775_s27 }
 0x21b   :  { %761 = vrot.lane.b32.xlu0 %v2388_v54, %s1775_s27 }
 0x21e   :  { %811 = vrot.lane.b32.xlu1 %v2386_v35, %s1776_s5 }
 0x21f   :  { %809 = vrot.lane.b32.xlu0 %v2388_v54, %s1776_s5 }
 0x222   :  { %892 = vrot.lane.b32.xlu1 %v2386_v35, %s1774_s3 }
 0x223   :  { %890 = vrot.lane.b32.xlu0 %v2388_v54, %s1774_s3 }
 0x226   :  { %767 = vrot.lane.b32.xlu1 %v2402_v14, %s1775_s27 }
 0x227   :  { %765 = vrot.lane.b32.xlu0 %v2404_v52, %s1775_s27 }
 0x22a   :  { %815 = vrot.lane.b32.xlu1 %v2402_v14, %s1776_s5 }
 0x22b   :  { %813 = vrot.lane.b32.xlu0 %v2404_v52, %s1776_s5 }
 0x22e   :  { %896 = vrot.lane.b32.xlu1 %v2402_v14, %s1774_s3 }
 0x22f   :  { %894 = vrot.lane.b32.xlu0 %v2404_v52, %s1774_s3 }
 0x232   :  { %771 = vrot.lane.b32.xlu1 %v2418_v19, %s1775_s27 }
 0x233   :  { %769 = vrot.lane.b32.xlu0 %v2420_v28, %s1775_s27 }
 0x236   :  { %819 = vrot.lane.b32.xlu1 %v2418_v19, %s1776_s5 }
 0x237   :  { %817 = vrot.lane.b32.xlu0 %v2420_v28, %s1776_s5 }
 0x23a   :  { %900 = vrot.lane.b32.xlu1 %v2418_v19, %s1774_s3 }
 0x23b   :  { %898 = vrot.lane.b32.xlu0 %v2420_v28, %s1774_s3 }
 0x23e   :  { %1139 = vperm.xlu1 %1681, %v1937_v25  }
 0x23f   :  { %1107 = vperm.xlu0 %1680, %v1877_v17   ;;  %v1175_v17 = vld [vmem:[%s2770_s1 + $0x8] sm:$0xff] }
 0x250   :  { %v744_v23 = vpop.permute.xlu1 %743 }
 0x251   :  { %v742_v26 = vpop.permute.xlu0 %741  ;;  %v838_v31 = vsel %vm371_vm1, %v2292_v55, %v744_v23 }
 0x252   :  { %v837_v25 = vsel %vm371_vm1, %v2294_v38, %v742_v26 }
 0x254   :  { %v792_v50 = vpop.permute.xlu1 %791 }
 0x255   :  { %v790_v33 = vpop.permute.xlu0 %789  ;;  %v855_v8 = vsel %vm853_vm2, %v838_v31, %v792_v50  ;;  %v1158_v31 = vsel %vm853_vm2, %v1142_v10, %v2275_v53  ;;  %v1145_v53 = vsel %vm371_vm1, %v2059_v60, %v2085_v9 }
 0x256   :  { %v854_v18 = vsel %vm853_vm2, %v837_v25, %v790_v33  ;;  %v1191_v16 = vmul.f32 %v1175_v17, %v855_v8  ;;  %v1161_v60 = vsel %vm853_vm2, %v1145_v53, %v2279_v11  ;;  %v1176_v11 = vld [vmem:[%s2770_s1 + $0x10] sm:$0xff] }
 0x258   :  { %v2450_v61 = vpop.permute.xlu1 %872 }
 0x259   :  { %2790 = vst [vmem:[#allocation14_spill] sm:$0xff] %v2450_v61  ;;  %v919_v57 = vsel %vm371_vm1, %v792_v50, %v2450_v61  ;;  %v2458_v63 = vpop.permute.xlu0 %870  ;;  %v1190_v50 = vmul.f32 %v1174_v49, %v854_v18 }
 0x25a   :  { %v935_v23 = vsel %vm853_vm2, %v919_v57, %v2292_v55  ;;  %v918_v26 = vsel %vm371_vm1, %v790_v33, %v2458_v63 }
 0x25b   :  { %v1207_v20 = vmul.f32 %v1159_v36, %v935_v23  ;;  %v934_v25 = vsel %vm853_vm2, %v918_v26, %v2294_v38  ;;  %v1177_v38 = vld [vmem:[%s2770_s1 + $0x18] sm:$0xff] }
 0x25c   :  { %v1206_v61 = vmul.f32 %v1158_v31, %v934_v25  ;;  %v748_v19 = vpop.permute.xlu1 %747 }
 0x25d   :  { %v1223_v37 = vadd.f32 %v1207_v20, %v1191_v16  ;;  %v746_v28 = vpop.permute.xlu0 %745  ;;  %v840_v12 = vsel %vm371_vm1, %v2310_v45, %v748_v19 }
 0x25e   :  { %v1222_v6 = vadd.f32 %v1206_v61, %v1190_v50  ;;  %v839_v8 = vsel %vm371_vm1, %v2312_v41, %v746_v28  ;;  %v1179_v50 = vld [vmem:[%s2770_s1 + $0x28] sm:$0xff] }
 0x25f   :  { %1256 = vrot.lane.b32.xlu0 %v1223_v37, %s1775_s27  ;;  %v1144_v37 = vsel %vm371_vm1, %v2041_v51, %v2069_v1 }
 0x260   :  { %v796_v55 = vpop.permute.xlu1 %795  ;;  %1254 = vrot.lane.b32.xlu1 %v1222_v6, %s1775_s27  ;;  %v1160_v1 = vsel %vm853_vm2, %v1144_v37, %v2094_v13  ;;  %v1147_v13 = vsel %vm371_vm1, %v2063_v62, %v2171_v27 }
 0x261   :  { %v794_v33 = vpop.permute.xlu0 %793  ;;  %v857_v16 = vsel %vm853_vm2, %v840_v12, %v796_v55  ;;  %v1163_v62 = vsel %vm853_vm2, %v1147_v13, %v2283_v29 }
 0x262   :  { %v1193_v61 = vmul.f32 %v1177_v38, %v857_v16 }
 0x264   :  { %v2481_v20 = vpop.permute.xlu1 %876 }
 0x265   :  { %v921_v10 = vsel %vm371_vm1, %v796_v55, %v2481_v20  ;;  %v2488_v17 = vpop.permute.xlu0 %874 }
 0x266   :  { %v937_v9 = vsel %vm853_vm2, %v921_v10, %v2310_v45  ;;  %v920_v19 = vsel %vm371_vm1, %v794_v33, %v2488_v17  ;;  %v856_v45 = vsel %vm853_vm2, %v839_v8, %v794_v33 }
 0x267   :  { %v1209_v49 = vmul.f32 %v1161_v60, %v937_v9  ;;  %v936_v51 = vsel %vm853_vm2, %v920_v19, %v2312_v41  ;;  %v1192_v26 = vmul.f32 %v1176_v11, %v856_v45  ;;  %v1178_v60 = vld [vmem:[%s2770_s1 + $0x20] sm:$0xff] }
 0x268   :  { %v752_v18 = vpop.permute.xlu1 %751  ;;  %v1208_v36 = vmul.f32 %v1160_v1, %v936_v51 }
 0x269   :  { %v1225_v57 = vadd.f32 %v1209_v49, %v1193_v61  ;;  %v750_v23 = vpop.permute.xlu0 %749  ;;  %v842_v41 = vsel %vm371_vm1, %v2328_v47, %v752_v18 }
 0x26a   :  { %v1224_v31 = vadd.f32 %v1208_v36, %v1192_v26  ;;  %v841_v38 = vsel %vm371_vm1, %v2331_v46, %v750_v23  ;;  %v1150_v26 = vsel %vm371_vm1, %v2051_v56, %v2071_v2  ;;  %v1182_v2 = vld [vmem:[%s2770_s1 + $0x40] sm:$0xff] }
 0x26b   :  { %1260 = vrot.lane.b32.xlu1 %v1225_v57, %s1775_s27 }
 0x26c   :  { %v800_v28 = vpop.permute.xlu1 %799 }
 0x26d   :  { %v798_v25 = vpop.permute.xlu0 %797  ;;  %v859_v6 = vsel %vm853_vm2, %v842_v41, %v800_v28  ;;  %v1183_v41 = vld [vmem:[%s2770_s1 + $0x48] sm:$0xff] }
 0x26e   :  { %v1195_v16 = vmul.f32 %v1179_v50, %v859_v6  ;;  %v858_v29 = vsel %vm853_vm2, %v841_v38, %v798_v25 }
 0x26f   :  { %1258 = vrot.lane.b32.xlu1 %v1224_v31, %s1775_s27  ;;  %v1194_v61 = vmul.f32 %v1178_v60, %v858_v29 }
 0x270   :  { %v2517_v55 = vpop.permute.xlu1 %880 }
 0x271   :  { %v923_v33 = vsel %vm371_vm1, %v800_v28, %v2517_v55  ;;  %v2521_v53 = vpop.permute.xlu0 %878  ;;  %v1151_v28 = vsel %vm371_vm1, %v2073_v3, %v2124_v34 }
 0x272   :  { %v939_v27 = vsel %vm853_vm2, %v923_v33, %v2328_v47  ;;  %v922_v12 = vsel %vm371_vm1, %v798_v25, %v2521_v53  ;;  %v1166_v33 = vsel %vm853_vm2, %v1150_v26, %v2081_v7 }
 0x273   :  { %v1211_v37 = vmul.f32 %v1163_v62, %v939_v27  ;;  %v938_v10 = vsel %vm853_vm2, %v922_v12, %v2331_v46  ;;  %v1167_v62 = vsel %vm853_vm2, %v1151_v28, %v2277_v42 }
 0x274   :  { %v756_v9 = vpop.permute.xlu1 %755  ;;  %v1210_v47 = vmul.f32 %v2197_v44, %v938_v10 }
 0x275   :  { %v1227_v19 = vadd.f32 %v1211_v37, %v1195_v16  ;;  %v754_v8 = vpop.permute.xlu0 %753  ;;  %v844_v49 = vsel %vm371_vm1, %v2350_v48, %v756_v9 }
 0x276   :  { %v1226_v46 = vadd.f32 %v1210_v47, %v1194_v61  ;;  %v843_v7 = vsel %vm371_vm1, %v2352_v32, %v754_v8 }
 0x277   :  { %1264 = vrot.lane.b32.xlu1 %v1227_v19, %s1775_s27 }
 0x278   :  { %v2541_v51 = vpop.permute.xlu1 %803 }
 0x279   :  { %v2545_v1 = vsel %vm853_vm2, %v844_v49, %v2541_v51  ;;  %v802_v11 = vpop.permute.xlu0 %801 }
 0x27a   :  { %v860_v9 = vsel %vm853_vm2, %v843_v7, %v802_v11 }
 0x27b   :  { %1262 = vrot.lane.b32.xlu1 %v1226_v46, %s1775_s27 }
 0x27c   :  { %v2548_v45 = vpop.permute.xlu1 %884 }
 0x27d   :  { %v2550_v44 = vpop.permute.xlu0 %882 }
 0x27e   :  { %v924_v25 = vsel %vm371_vm1, %v802_v11, %v2550_v44 }
 0x27f   :  { %v940_v38 = vsel %vm853_vm2, %v924_v25, %v2352_v32 }
 0x280   :  { %v760_v18 = vpop.permute.xlu1 %759  ;;  %v1212_v61 = vmul.f32 %v2257_v21, %v940_v38  ;;  %v1185_v21 = vld [vmem:[%s2770_s1 + $0x58] sm:$0xff] }
 0x281   :  { %v758_v57 = vpop.permute.xlu0 %757  ;;  %v846_v31 = vsel %vm371_vm1, %v2368_v43, %v760_v18  ;;  %v1153_v18 = vsel %vm371_vm1, %v2077_v5, %v2155_v30 }
 0x282   :  { %v845_v13 = vsel %vm371_vm1, %v2370_v15, %v758_v57  ;;  %v1169_v26 = vsel %vm853_vm2, %v1153_v18, %v2150_v39  ;;  %v1184_v39 = vld [vmem:[%s2770_s1 + $0x50] sm:$0xff] }
 0x284   :  { %v808_v36 = vpop.permute.xlu1 %807 }
 0x285   :  { %v806_v23 = vpop.permute.xlu0 %805  ;;  %v863_v50 = vsel %vm853_vm2, %v846_v31, %v808_v36 }
 0x286   :  { %v862_v3 = vsel %vm853_vm2, %v845_v13, %v806_v23  ;;  %v1199_v16 = vmul.f32 %v1183_v41, %v863_v50 }
 0x287   :  { %v1198_v60 = vmul.f32 %v1182_v2, %v862_v3 }
 0x288   :  { %v2568_v56 = vpop.permute.xlu1 %888 }
 0x289   :  { %v927_v34 = vsel %vm371_vm1, %v808_v36, %v2568_v56  ;;  %v2576_v6 = vpop.permute.xlu0 %886 }
 0x28a   :  { %v943_v27 = vsel %vm853_vm2, %v927_v34, %v2368_v43  ;;  %v926_v12 = vsel %vm371_vm1, %v806_v23, %v2576_v6  ;;  %v1180_v43 = vld [vmem:[%s2770_s1 + $0x30] sm:$0xff]  ;;  %v1152_v23 = vsel %vm371_vm1, %v2055_v58, %v2075_v4 }
 0x28b   :  { %v1215_v37 = vmul.f32 %v1167_v62, %v943_v27  ;;  %v942_v10 = vsel %vm853_vm2, %v926_v12, %v2370_v15  ;;  %v1196_v15 = vmul.f32 %v1180_v43, %v860_v9  ;;  %v1168_v4 = vsel %vm853_vm2, %v1152_v23, %v2108_v24  ;;  %v1187_v24 = vld [vmem:[%s2770_s1 + $0x68] sm:$0xff] }
 0x28c   :  { %v1214_v29 = vmul.f32 %v1166_v33, %v942_v10  ;;  %v764_v42 = vpop.permute.xlu1 %763 }
 0x28d   :  { %v1231_v19 = vadd.f32 %v1215_v37, %v1199_v16  ;;  %v762_v47 = vpop.permute.xlu0 %761  ;;  %v1228_v8 = vadd.f32 %v1212_v61, %v1196_v15  ;;  %v848_v11 = vsel %vm371_vm1, %v2386_v35, %v764_v42  ;;  %v1154_v37 = vsel %vm371_vm1, %v2057_v59, %v2130_v40  ;;  %v2791_v40 = vld [vmem:[#allocation8_spill] sm:$0xff] }
 0x28e   :  { %v1230_v49 = vadd.f32 %v1214_v29, %v1198_v60  ;;  %v847_v25 = vsel %vm371_vm1, %v2388_v54, %v762_v47  ;;  %v1186_v47 = vld [vmem:[%s2770_s1 + $0x60] sm:$0xff] }
 0x28f   :  { %1272 = vrot.lane.b32.xlu0 %v1231_v19, %s1775_s27  ;;  %v1170_v19 = vsel %vm853_vm2, %v1154_v37, %v2791_v40 }
 0x290   :  { %v812_v46 = vpop.permute.xlu1 %811  ;;  %1270 = vrot.lane.b32.xlu1 %v1230_v49, %s1775_s27 }
 0x291   :  { %v810_v32 = vpop.permute.xlu0 %809  ;;  %v865_v57 = vsel %vm853_vm2, %v848_v11, %v812_v46  ;;  %v2793_v11 = vld [vmem:[#allocation13_spill] sm:$0xff] }
 0x292   :  { %v1201_v13 = vmul.f32 %v1185_v21, %v865_v57  ;;  %v1188_v57 = vld [vmem:[%s2770_s1 + $0x70] sm:$0xff] }
 0x294   :  { %v2608_v36 = vpop.permute.xlu1 %892  ;;  %1266 = vrot.lane.b32.xlu1 %v1228_v8, %s1775_s27 }
 0x295   :  { %v929_v5 = vsel %vm371_vm1, %v812_v46, %v2608_v36  ;;  %v2616_v30 = vpop.permute.xlu0 %890 }
 0x296   :  { %v945_v28 = vsel %vm853_vm2, %v929_v5, %v2386_v35  ;;  %v928_v31 = vsel %vm371_vm1, %v810_v32, %v2616_v30  ;;  %v864_v35 = vsel %vm853_vm2, %v847_v25, %v810_v32 }
 0x297   :  { %v1217_v41 = vmul.f32 %v1169_v26, %v945_v28  ;;  %v944_v58 = vsel %vm853_vm2, %v928_v31, %v2388_v54  ;;  %v1200_v33 = vmul.f32 %v1184_v39, %v864_v35  ;;  %v2794_v28 = vld [vmem:[#allocation11_spill] sm:$0xff]  ;;  %v2795_v39 = vld [vmem:[#allocation12_spill] sm:$0xff] }
 0x298   :  { %v768_v50 = vpop.permute.xlu1 %767  ;;  %v1216_v3 = vmul.f32 %v1168_v4, %v944_v58 }
 0x299   :  { %v1233_v2 = vadd.f32 %v1217_v41, %v1201_v13  ;;  %v766_v34 = vpop.permute.xlu0 %765  ;;  %v850_v54 = vsel %vm371_vm1, %v2402_v14, %v768_v50 }
 0x29a   :  { %v1232_v27 = vadd.f32 %v1216_v3, %v1200_v33  ;;  %v849_v42 = vsel %vm371_vm1, %v2404_v52, %v766_v34  ;;  %v1189_v3 = vld [vmem:[%s2770_s1 + $0x78] sm:$0xff] }
 0x29b   :  { %1276 = vrot.lane.b32.xlu0 %v1233_v2, %s1775_s27  ;;  %v925_v2 = vsel %vm371_vm1, %v2541_v51, %v2548_v45  ;;  %v2796_v33 = vld [vmem:[#allocation10_spill] sm:$0xff] }
 0x29c   :  { %v816_v62 = vpop.permute.xlu1 %815 }
 0x29d   :  { %v814_v12 = vpop.permute.xlu0 %813  ;;  %v867_v38 = vsel %vm853_vm2, %v850_v54, %v816_v62 }
 0x29e   :  { %v1203_v43 = vmul.f32 %v1187_v24, %v867_v38  ;;  %v2798_v24 = vld [vmem:[#allocation9_spill] sm:$0xff]  ;;  %v2799_v38 = vld [vmem:[#allocation6_spill] sm:$0xff] }
 0x29f   :  { %1274 = vrot.lane.b32.xlu0 %v1232_v27, %s1775_s27  ;;  %v1149_v37 = vsel %vm371_vm1, %v2799_v38, %v2798_v24 }
 0x2a0   :  { %v2642_v16 = vpop.permute.xlu1 %896 }
 0x2a1   :  { %v931_v10 = vsel %vm371_vm1, %v816_v62, %v2642_v16  ;;  %v2649_v7 = vpop.permute.xlu0 %894  ;;  %v2797_v62 = vld [vmem:[#allocation7_spill] sm:$0xff] }
 0x2a2   :  { %v947_v60 = vsel %vm853_vm2, %v931_v10, %v2402_v14  ;;  %v930_v29 = vsel %vm371_vm1, %v814_v12, %v2649_v7  ;;  %v866_v14 = vsel %vm853_vm2, %v849_v42, %v814_v12  ;;  %v1157_v27 = vsel %vm371_vm1, %v2797_v62, %v2796_v33  ;;  %v1181_v12 = vld [vmem:[%s2770_s1 + $0x38] sm:$0xff]  ;;  %s1777_s1 = smov [#allocation2]  }
 0x2a3   :  { %v1219_v9 = vmul.f32 %v2242_v0, %v947_v60  ;;  %v946_v59 = vsel %vm853_vm2, %v930_v29, %v2404_v52  ;;  %v1202_v46 = vmul.f32 %v1186_v47, %v866_v14  ;;  %v2792_v52 = vld [vmem:[#allocation5_spill] sm:$0xff] }
 0x2a4   :  { %v1218_v49 = vmul.f32 %v1170_v19, %v946_v59  ;;  %v1156_v8 = vsel %vm371_vm1, %v2792_v52, %v2230_v22  ;;  %v772_v18 = vpop.permute.xlu1 %771  ;;  %v1197_v59 = vmul.f32 %v1181_v12, %v2545_v1 }
 0x2a5   :  { %v1235_v61 = vadd.f32 %v1219_v9, %v1203_v43  ;;  %v770_v15 = vpop.permute.xlu0 %769  ;;  %v1172_v31 = vsel %vm853_vm2, %v1156_v8, %v2794_v28  ;;  %v852_v35 = vsel %vm371_vm1, %v2795_v39, %v772_v18  ;;  %v941_v43 = vsel %vm853_vm2, %v925_v2, %v2350_v48 }
 0x2a6   :  { %v1234_v32 = vadd.f32 %v1218_v49, %v1202_v46  ;;  %v851_v21 = vsel %vm371_vm1, %v2793_v11, %v770_v15 }
 0x2a7   :  { %1280 = vrot.lane.b32.xlu0 %v1235_v61, %s1775_s27 }
 0x2a8   :  { %v820_v41 = vpop.permute.xlu1 %819 }
 0x2a9   :  { %v818_v0 = vpop.permute.xlu0 %817  ;;  %v869_v34 = vsel %vm853_vm2, %v852_v35, %v820_v41 }
 0x2aa   :  { %v868_v23 = vsel %vm853_vm2, %v851_v21, %v818_v0  ;;  %v1205_v29 = vmul.f32 %v1189_v3, %v869_v34 }
 0x2ab   :  { %1278 = vrot.lane.b32.xlu0 %v1234_v32, %s1775_s27  ;;  %v1204_v25 = vmul.f32 %v1188_v57, %v868_v23 }
 0x2ac   :  { %v2686_v4 = vpop.permute.xlu1 %900 }
 0x2ad   :  { %v2677_v5 = vpop.permute.xlu0 %898  ;;  %v933_v50 = vsel %vm371_vm1, %v820_v41, %v2686_v4 }
 0x2ae   :  { %v932_v26 = vsel %vm371_vm1, %v818_v0, %v2677_v5  ;;  %v949_v51 = vsel %vm853_vm2, %v933_v50, %v2795_v39 }
 0x2af   :  { %v948_v22 = vsel %vm853_vm2, %v932_v26, %v2793_v11  ;;  %v2800_v11 = vld [vmem:[#allocation14_spill] sm:$0xff] }
 0x2b0   :  { %v1220_v13 = vmul.f32 %v1172_v31, %v948_v22 }
 0x2b2   :  { %v1236_v58 = vadd.f32 %v1220_v13, %v1204_v25 }
 0x2b4   :  { %1282 = vrot.lane.b32.xlu0 %v1236_v58, %s1775_s27 }
 0x2bd   :  { %v1140_v54 = vpop.permute.xlu1 %1139 }
 0x2be   :  { %v1173_v10 = vsel %vm853_vm2, %v1157_v27, %v1140_v54  ;;  %v1108_v60 = vpop.permute.xlu0 %1107 }
 0x2bf   :  { %v1221_v42 = vmul.f32 %v1173_v10, %v949_v51  ;;  %v1165_v9 = vsel %vm853_vm2, %v1149_v37, %v1108_v60 }
 0x2c0   :  { %v1213_v40 = vmul.f32 %v1165_v9, %v941_v43 }
 0x2c1   :  { %v1237_v19 = vadd.f32 %v1221_v42, %v1205_v29 }
 0x2c2   :  { %v1229_v47 = vadd.f32 %v1213_v40, %v1197_v59 }
 0x2c3   :  { %1284 = vrot.lane.b32.xlu0 %v1237_v19, %s1775_s27 }
 0x2c4   :  { %1268 = vrot.lane.b32.xlu1 %v1229_v47, %s1775_s27  ;;  %s1460_s27 = sshll.u32 %s1777_s1, 4  ;;  %s1461_s27 = int_to_ptr.vmem [resolvable:$true] %s1460_s27 }
 0x2c5   :  { %s1746_s8 = scalar_lea.vmem %s1461_s27, 256  ;;  %p1751_p1 = scmp.lt.s32.totalorder %s1461_s27, %s1461_s27 }
 0x2c6   :  { %p1747_p0 = scmp.ne.s32.totalorder %s1461_s27, %s1746_s8  ;;  %p1752_p2 = scmp.lt.s32.totalorder %s1746_s8, %s1746_s8 }
 0x2c8   :  { %p1753_p3 = por %p1752_p2, %p1751_p1 }
 0x2ca   :  { %p1754_p4 = pnand %p1753_p3, %p1747_p0 }
 0x2d1   :  { %v1257_v49 = vpop.permute.xlu0 %1256 }
 0x2d2   :  { %v1255_v14 = vpop.permute.xlu1 %1254  ;;  %v1303_v1 = vsel %vm371_vm1, %v2800_v11, %v1257_v49 }
 0x2d3   :  { %v1302_v21 = vsel %vm371_vm1, %v2458_v63, %v1255_v14  ;;  %v1324_v28 = vrot.slane %v1303_v1, 4 }
 0x2d4   :  { %v1318_v31 = vrot.slane %v1302_v21, 4 }
 0x2d6   :  { %v1319_v35 = vadd.f32 %v1318_v31, %v1302_v21 }
 0x2d8   :  { %v1320_v24 = vrot.slane %v1319_v35, 2 }
 0x2da   :  { %v1321_v47 = vadd.f32 %v1320_v24, %v1319_v35 }
 0x2dd   :  { %v1261_v61 = vpop.permute.xlu1 %1260 }
 0x2e1   :  { %v1259_v46 = vpop.permute.xlu1 %1258 }
 0x2e2   :  { %v1304_v57 = vsel %vm371_vm1, %v2488_v17, %v1259_v46  ;;  %v1325_v17 = vadd.f32 %v1324_v28, %v1303_v1 }
 0x2e3   :  { %v1330_v25 = vrot.slane %v1304_v57, 4 }
 0x2e4   :  { %v1326_v54 = vrot.slane %v1325_v17, 2 }
 0x2e6   :  { %v1327_v59 = vadd.f32 %v1326_v54, %v1325_v17 }
 0x2e9   :  { %v1265_v0 = vpop.permute.xlu1 %1264 }
 0x2ed   :  { %v1263_v48 = vpop.permute.xlu1 %1262 }
 0x2ee   :  { %v1306_v63 = vsel %vm371_vm1, %v2521_v53, %v1263_v48 }
 0x2ef   :  { %v1342_v3 = vrot.slane %v1306_v63, 4 }
 0x2f1   :  { %v1343_v10 = vadd.f32 %v1342_v3, %v1306_v63 }
 0x2f3   :  { %v1344_v49 = vrot.slane %v1343_v10, 2 }
 0x301   :  { %v1273_v15 = vpop.permute.xlu0 %1272 }
 0x302   :  { %v1271_v18 = vpop.permute.xlu1 %1270  ;;  %v1311_v23 = vsel %vm371_vm1, %v2568_v56, %v1273_v15 }
 0x303   :  { %v1310_v26 = vsel %vm371_vm1, %v2576_v6, %v1271_v18  ;;  %v1372_v41 = vrot.slane %v1311_v23, 4  ;;  %v1331_v6 = vadd.f32 %v1330_v25, %v1304_v57  ;;  %v1322_v18 = vrot.slane %v1321_v47, 1 }
 0x304   :  { %v1366_v58 = vrot.slane %v1310_v26, 4  ;;  %v1345_v57 = vadd.f32 %v1344_v49, %v1343_v10 }
 0x305   :  { %v1373_v34 = vadd.f32 %v1372_v41, %v1311_v23  ;;  %v1323_v63 = vadd.f32 %v1322_v18, %v1321_v47 }
 0x306   :  { %v1267_v50 = vpop.permute.xlu1 %1266  ;;  %v1367_v33 = vadd.f32 %v1366_v58, %v1310_v26 }
 0x307   :  { %v1308_v53 = vsel %vm371_vm1, %v2550_v44, %v1267_v50  ;;  %v1374_v60 = vrot.slane %v1373_v34, 2  ;;  %v1346_v50 = vrot.slane %v1345_v57, 1 }
 0x308   :  { %v1368_v44 = vrot.slane %v1367_v33, 2  ;;  %v1354_v29 = vrot.slane %v1308_v53, 4 }
 0x309   :  { %v1375_v15 = vadd.f32 %v1374_v60, %v1373_v34 }
 0x30a   :  { %v1355_v46 = vadd.f32 %v1354_v29, %v1308_v53 }
 0x30b   :  { %v1376_v23 = vrot.slane %v1375_v15, 1 }
 0x30c   :  { %v1356_v28 = vrot.slane %v1355_v46, 2 }
 0x30d   :  { %v1277_v32 = vpop.permute.xlu0 %1276 }
 0x30e   :  { %v1313_v2 = vsel %vm371_vm1, %v2608_v36, %v1277_v32  ;;  %v1332_v36 = vrot.slane %v1331_v6, 2 }
 0x30f   :  { %v1384_v38 = vrot.slane %v1313_v2, 4 }
 0x310   :  { %v1333_v14 = vadd.f32 %v1332_v36, %v1331_v6 }
 0x311   :  { %v1275_v52 = vpop.permute.xlu0 %1274  ;;  %v1385_v40 = vadd.f32 %v1384_v38, %v1313_v2  ;;  %v1357_v2 = vadd.f32 %v1356_v28, %v1355_v46 }
 0x312   :  { %v1312_v22 = vsel %vm371_vm1, %v2616_v30, %v1275_v52  ;;  %v1305_v30 = vsel %vm371_vm1, %v2481_v20, %v1261_v61  ;;  %v1307_v20 = vsel %vm371_vm1, %v2517_v55, %v1265_v0  ;;  %v1369_v55 = vadd.f32 %v1368_v44, %v1367_v33 }
 0x313   :  { %v1378_v39 = vrot.slane %v1312_v22, 4  ;;  %v1336_v37 = vrot.slane %v1305_v30, 4  ;;  %v1348_v61 = vrot.slane %v1307_v20, 4  ;;  %v1328_v52 = vrot.slane %v1327_v59, 1 }
 0x314   :  { %v1386_v48 = vrot.slane %v1385_v40, 2  ;;  %v1334_v1 = vrot.slane %v1333_v14, 1  ;;  %v1370_v26 = vrot.slane %v1369_v55, 1 }
 0x315   :  { %v1379_v62 = vadd.f32 %v1378_v39, %v1312_v22  ;;  %v1349_v21 = vadd.f32 %v1348_v61, %v1307_v20 }
 0x316   :  { %v1387_v41 = vadd.f32 %v1386_v48, %v1385_v40  ;;  %v1335_v17 = vadd.f32 %v1334_v1, %v1333_v14  ;;  %v1371_v6 = vadd.f32 %v1370_v26, %v1369_v55 }
 0x317   :  { %v1380_v42 = vrot.slane %v1379_v62, 2  ;;  %v1350_v35 = vrot.slane %v1349_v21, 2 }
 0x319   :  { %v1281_v8 = vpop.permute.xlu0 %1280  ;;  %v1381_v32 = vadd.f32 %v1380_v42, %v1379_v62 }
 0x31a   :  { %v1315_v51 = vsel %vm371_vm1, %v2642_v16, %v1281_v8 }
 0x31b   :  { %v1396_v19 = vrot.slane %v1315_v51, 4  ;;  %v1382_v31 = vrot.slane %v1381_v32, 1 }
 0x31d   :  { %v1279_v13 = vpop.permute.xlu0 %1278  ;;  %v1397_v8 = vadd.f32 %v1396_v19, %v1315_v51  ;;  %v1383_v3 = vadd.f32 %v1382_v31, %v1381_v32  ;;  %v1347_v51 = vadd.f32 %v1346_v50, %v1345_v57 }
 0x31e   :  { %v1314_v56 = vsel %vm371_vm1, %v2649_v7, %v1279_v13  ;;  %v1329_v13 = vadd.f32 %v1328_v52, %v1327_v59 }
 0x31f   :  { %v1390_v27 = vrot.slane %v1314_v56, 4  ;;  %v1398_v58 = vrot.slane %v1397_v8, 2 }
 0x320   :  { %v1431_v38 = vsel %vm1430_vm3, %v1329_v13, %v1323_v63 }
 0x321   :  { %v1391_v43 = vadd.f32 %v1390_v27, %v1314_v56  ;;  %v1377_v56 = vadd.f32 %v1376_v23, %v1375_v15  ;;  %v1388_v27 = vrot.slane %v1387_v41, 1  ;;  %v1433_v20 = vsel %vm1432_vm4, %v1335_v17, %v1431_v38 }
 0x323   :  { %v1392_v16 = vrot.slane %v1391_v43, 2  ;;  %v1444_v10 = vsel %vm1430_vm3, %v1377_v56, %v1371_v6 }
 0x325   :  { %v1393_v22 = vadd.f32 %v1392_v16, %v1391_v43  ;;  %v1358_v43 = vrot.slane %v1357_v2, 1 }
 0x326   :  { %v1283_v12 = vpop.permute.xlu0 %1282 }
 0x327   :  { %v1316_v7 = vsel %vm371_vm1, %v2677_v5, %v1283_v12  ;;  %v1337_v5 = vadd.f32 %v1336_v37, %v1305_v30  ;;  %v1394_v34 = vrot.slane %v1393_v22, 1  ;;  %v1399_v12 = vadd.f32 %v1398_v58, %v1397_v8 }
 0x328   :  { %v1402_v9 = vrot.slane %v1316_v7, 4  ;;  %v1351_v37 = vadd.f32 %v1350_v35, %v1349_v21  ;;  %v1359_v32 = vadd.f32 %v1358_v43, %v1357_v2 }
 0x329   :  { %v1338_v11 = vrot.slane %v1337_v5, 2  ;;  %v1395_v44 = vadd.f32 %v1394_v34, %v1393_v22  ;;  %v1400_v59 = vrot.slane %v1399_v12, 1 }
 0x32a   :  { %v1403_v0 = vadd.f32 %v1402_v9, %v1316_v7  ;;  %v1389_v9 = vadd.f32 %v1388_v27, %v1387_v41  ;;  %v1352_v19 = vrot.slane %v1351_v37, 1 }
 0x32b   :  { %v1339_v39 = vadd.f32 %v1338_v11, %v1337_v5  ;;  %v1401_v16 = vadd.f32 %v1400_v59, %v1399_v12 }
 0x32c   :  { %v1404_v25 = vrot.slane %v1403_v0, 2  ;;  %v1353_v52 = vadd.f32 %v1352_v19, %v1351_v37 }
 0x32d   :  { %v1340_v7 = vrot.slane %v1339_v39, 1 }
 0x32e   :  { %v1405_v33 = vadd.f32 %v1404_v25, %v1403_v0 }
 0x32f   :  { %v1341_v40 = vadd.f32 %v1340_v7, %v1339_v39 }
 0x330   :  { %v1406_v29 = vrot.slane %v1405_v33, 1 }
 0x331   :  { %v1435_v61 = vsel %vm1434_vm5, %v1341_v40, %v1433_v20 }
 0x332   :  { %v1407_v15 = vadd.f32 %v1406_v29, %v1405_v33  ;;  %v1437_v46 = vsel %vm1436_vm6, %v1347_v51, %v1435_v61 }
 0x333   :  { %v1439_v1 = vsel %vm1438_vm7, %v1353_v52, %v1437_v46 }
 0x334   :  { %v1441_v57 = vsel %vm1440_vm8, %v1359_v32, %v1439_v1 }
 0x335   :  { %v1285_v30 = vpop.permute.xlu0 %1284 }
 0x336   :  { %v1317_v53 = vsel %vm371_vm1, %v2686_v4, %v1285_v30  ;;  %v1269_v62 = vpop.permute.xlu1 %1268  ;;  %v1445_v4 = vsel %vm1432_vm4, %v1383_v3, %v1444_v10 }
 0x337   :  { %v1408_v54 = vrot.slane %v1317_v53, 4  ;;  %v1309_v24 = vsel %vm371_vm1, %v2548_v45, %v1269_v62  ;;  %v1446_v5 = vsel %vm1434_vm5, %v1389_v9, %v1445_v4 }
 0x338   :  { %v1360_v36 = vrot.slane %v1309_v24, 4  ;;  %v1447_v49 = vsel %vm1436_vm6, %v1395_v44, %v1446_v5 }
 0x339   :  { %v1409_v60 = vadd.f32 %v1408_v54, %v1317_v53  ;;  %v1448_v18 = vsel %vm1438_vm7, %v1401_v16, %v1447_v49 }
 0x33a   :  { %v1361_v42 = vadd.f32 %v1360_v36, %v1309_v24  ;;  %v1449_v21 = vsel %vm1440_vm8, %v1407_v15, %v1448_v18 }
 0x33b   :  { %v1410_v45 = vrot.slane %v1409_v60, 2 }
 0x33c   :  { %v1362_v47 = vrot.slane %v1361_v42, 2 }
 0x33d   :  { %v1411_v14 = vadd.f32 %v1410_v45, %v1409_v60 }
 0x33e   :  { %v1363_v55 = vadd.f32 %v1362_v47, %v1361_v42 }
 0x33f   :  { %v1412_v0 = vrot.slane %v1411_v14, 1 }
 0x340   :  { %v1364_v48 = vrot.slane %v1363_v55, 1 }
 0x341   :  { %v1413_v8 = vadd.f32 %v1412_v0, %v1411_v14 }
 0x342   :  { %v1365_v11 = vadd.f32 %v1364_v48, %v1363_v55 }
 0x343   :  { %v1450_v23 = vsel %vm1442_vm9, %v1413_v8, %v1449_v21 }
 0x344   :  { %v1443_v26 = vsel %vm1442_vm9, %v1365_v11, %v1441_v57  ;;  %1454 = vst [vmem:[#allocation2 + $0x8] sm:$0xff] %v1450_v23 }
 0x345   :  { %1453 = vst [vmem:[#allocation2] sm:$0xff] %v1443_v26 }
 0x346   :  { %1757 = shalt.err (!%p1754_p4)
}
 0x347   :  { %s1758_s11 = scalar_lea.hbm %s2775_s6, 256 }
 0x348   :  { %p1759_p5 = scmp.ne.s32.totalorder %s2775_s6, %s1758_s11  ;;  %p1762_p6 = scmp.lt.u32.totalorder %s1758_s11, %s2775_s6 }
 0x34a   :  { %p1764_p7 = pnand %p1762_p6, %p1759_p5 }
 0x34c   :  { %1767 = shalt.err (!%p1764_p7)
}
 0x34d   :  { %s1778_s16 = smov 128   ;;  %s1779_s17 = smov 8  }
 0x34e   :  { %1466 = dma.vmem_to_hbm [thread:$0]  %s1461_s27, 256, %s2775_s6, [#allocation3], %s1778_s16, %s1778_s16, %s1779_s17  }
 0x34f   :  { %1768 = dma.done.wait [#allocation3], 256  }
 0x350   :  { %1769 = vsyncadd [#allocation3], 4294967040 }
 0x351   :  { %1470 = vsyncpa [#allocation3], 1 }

</bundles_post_ra>
